<compile_context>
chip_gen: v6e
topology: v6e:2x2x1
jax: 0.10.0
libtpu: 0.0.40
codegen_flags: <defaults>
</compile_context>

<pallas_src>
import functools
import math

import jax
import jax.numpy as jnp
from jax.experimental import pallas as pl
from jax.experimental.pallas import tpu as pltpu

N = 16           # nodes per graph
C = 32           # in_channels
B = 8            # graphs per pallas_call  (B*N = 128 -> full lane width)
RATIO = 0.5
NEG_SLOPE = 0.2  # GATConv default leaky-relu slope


def sag_score_kernel(xa_ref, adj_ref, p_ref, scal_ref, out_ref):
    """Whole batch in one step, node-flattened.

    xa_ref  : (BN, C+1)  [x | 1]  augmented node features (all graphs)
    adj_ref : (BN, BN)   int8 block-diagonal adjacency, adj[i, j] = 1 if j -> i
                         (within-graph only; self loops added here)
    p_ref   : (C+3, C+2) rows [ [W1 | W1@att_src1 | W1@att_dst1]  (C rows);
                                zeros (row hit by the ones column);
                                [b1 | 0 0] ; [w2^T | 0 0] ]
    scal_ref: (3,)       SMEM scalars [att_src2, att_dst2, b2]
    out_ref : (BN, C+1)  [x * score | score]
    """
    bn = xa_ref.shape[0]
    c = xa_ref.shape[1] - 1
    xa = xa_ref[...]                                        # (BN, C+1)

    # Block-diagonal edge mask; OR in the self-loop diagonal via iota equality.
    row = jax.lax.broadcasted_iota(jnp.int32, (bn, bn), 0)
    col = jax.lax.broadcasted_iota(jnp.int32, (bn, bn), 1)
    adj = adj_ref[...].astype(jnp.int32)
    mask = (adj > 0) | (row == col)
    neg = jnp.float32(-1e30)

    p = p_ref[...]
    w_fused = p[0:c + 1, :]                                 # (C+1, C+2)
    b1 = p[c + 1:c + 2, 0:c]                                # (1, C)
    w2_row = p[c + 2:c + 3, 0:c]                            # (1, C)
    a_src2 = scal_ref[0]
    a_dst2 = scal_ref[1]
    b2 = scal_ref[2]

    # ---- GATConv #1 : (BN, C) -> (BN, C), heads=1 (one fused MXU matmul) ----
    hf = jnp.dot(xa, w_fused, preferred_element_type=jnp.float32)   # (BN, C+2)
    h1 = hf[:, 0:c]                                         # x @ W1
    a_src = hf[:, c:c + 1]                                  # x @ (W1 @ att_src1)
    a_dst = hf[:, c + 1:c + 2]                              # x @ (W1 @ att_dst1)

    e1 = a_dst + jnp.transpose(a_src)                       # e[i, j] = dst_i + src_j
    e1 = jnp.where(e1 > 0, e1, NEG_SLOPE * e1)              # LeakyReLU
    e1 = jnp.where(mask, e1, neg)
    e1 = e1 - jnp.max(e1, axis=1, keepdims=True)
    p1 = jnp.exp(e1)                                        # masked logits underflow to 0
    alpha1 = p1 * pl.reciprocal(jnp.sum(p1, axis=1, keepdims=True), approx=True)
    out1 = jnp.dot(alpha1, h1, preferred_element_type=jnp.float32) + b1
    out1 = jnp.maximum(out1, 0.0)                           # self.act = ReLU

    # ---- GATConv #2 : (BN, C) -> (BN, 1) — width-1 output, kept off the MXU ----
    h2 = jnp.sum(out1 * w2_row, axis=1, keepdims=True)      # (BN, 1) VPU + row-reduce
    e2 = a_dst2 * h2 + jnp.transpose(a_src2 * h2)           # (BN, BN)
    e2 = jnp.where(e2 > 0, e2, NEG_SLOPE * e2)
    e2 = jnp.where(mask, e2, neg)
    e2 = e2 - jnp.max(e2, axis=1, keepdims=True)
    p2 = jnp.exp(e2)
    alpha2 = p2 * pl.reciprocal(jnp.sum(p2, axis=1, keepdims=True), approx=True)
    s = jnp.sum(alpha2 * jnp.transpose(h2), axis=1, keepdims=True) + b2   # (BN, 1)
    s = jnp.maximum(s, 0.0)                                 # self.act = ReLU
    s = jnp.tanh(s)                                         # nonlinearity (min_score None)

    # single full-ref store: [x | 1] * s == [x * s | s]
    out_ref[...] = xa * s


def _pack_params(params, c):
    """Consolidate the 8 GATConv params into one VMEM buffer + one SMEM triple.

    The attention projections are pre-folded into the main weight:
    x @ (W1 @ a) == (x @ W1) @ a, so layer 1 is a single MXU matmul.
    """
    w1, asrc1, adst1, b1, w2, asrc2, adst2, b2 = params
    f32 = jnp.float32
    w1 = w1.astype(f32)
    v_src = jnp.dot(w1, asrc1.astype(f32))                          # (C, 1)
    v_dst = jnp.dot(w1, adst1.astype(f32))                          # (C, 1)
    w_fused = jnp.concatenate([w1, v_src, v_dst], axis=1)           # (C, C+2)
    zero_row = jnp.zeros((1, c + 2), f32)                           # row for the ones column
    pad2 = jnp.zeros((1, 2), f32)
    row_b1 = jnp.concatenate([b1.astype(f32).reshape(1, c), pad2], axis=1)
    row_w2 = jnp.concatenate([w2.astype(f32).reshape(1, c), pad2], axis=1)
    pbuf = jnp.concatenate([w_fused, zero_row, row_b1, row_w2], axis=0)   # (C+3, C+2)
    scal = jnp.concatenate(
        [asrc2.reshape(-1), adst2.reshape(-1), b2.reshape(-1)]).astype(f32)  # (3,)
    return pbuf, scal


def sag_pool_scores(x_b, adj_edges_b, params):
    """Fused two-layer GATConv scorer for a batch of graphs (one kernel step).

    Returns (score (B, N), x*score (B, N, C)).
    """
    b, n, c = x_b.shape
    bn = b * n

    # Block-diagonal batched adjacency (no self loops) as int8.
    eye_b = jnp.eye(b, dtype=jnp.float32)
    adj_bd = (adj_edges_b.astype(jnp.float32)[:, :, None, :] *
              eye_b[:, None, :, None]).reshape(bn, bn)
    adj_bd = (adj_bd > 0).astype(jnp.int8)

    # Augment x with a ones column so the kernel emits [x*s | s] in one store.
    xa = jnp.concatenate(
        [x_b.reshape(bn, c).astype(jnp.float32), jnp.ones((bn, 1), jnp.float32)],
        axis=1)

    pbuf, scal = _pack_params(params, c)

    # TODO(synk): for large N, tile the (BN, BN) logits over destination-row
    # blocks and set vmem_limit_bytes explicitly (v7x has only 64 MiB VMEM);
    # also feed the MXU bf16 operands for x / W1 at that size.  At BN=128 the
    # working set (x 17 KB, adj 16 KB, params 5 KB, out 17 KB) is trivial.
    # TODO(synk): on v7x a 2-step leading "parallel" grid axis (B/2 graphs per
    # step) would engage both TensorCores; at this size one step is faster.
    out = pl.pallas_call(
        sag_score_kernel,
        grid=(1,),
        in_specs=[
            pl.BlockSpec((bn, c + 1), lambda i: (0, 0)),          # [x | 1]
            pl.BlockSpec((bn, bn), lambda i: (0, 0)),             # block-diag adjacency
            pl.BlockSpec((c + 3, c + 2), lambda i: (0, 0)),       # packed GAT params
            pl.BlockSpec(memory_space=pltpu.MemorySpace.SMEM),    # [a_src2, a_dst2, b2]
        ],
        out_specs=pl.BlockSpec((bn, c + 1), lambda i: (0, 0)),
        out_shape=jax.ShapeDtypeStruct((bn, c + 1), jnp.float32),
        compiler_params=pltpu.CompilerParams(
            dimension_semantics=("arbitrary",)),
    )(xa, adj_bd, pbuf, scal)

    out = out.reshape(b, n, c + 1)
    return out[:, :, c], out[:, :, :c]


@functools.partial(jax.jit, static_argnames=("ratio", "multiplier"))
def sag_pooling_forward_batched(x_b, adj_edges_b, params, ratio=RATIO, multiplier=1.0):
    """B graphs (shared node count) pooled with one pallas_call."""
    bsz, n, _ = x_b.shape
    score_b, wx_b = sag_pool_scores(x_b, adj_edges_b, params)

    k = int(math.ceil(ratio * n))
    # stable argsort; ties (e.g. many ReLU-zeroed scores) break by node index.
    perm = jnp.argsort(-score_b, axis=1)[:, :k]                       # (B, k)
    x_out = jnp.take_along_axis(wx_b, perm[:, :, None], axis=1)       # (B, k, C)
    if multiplier != 1.0:
        x_out = multiplier * x_out
    score_perm = jnp.take_along_axis(score_b, perm, axis=1)           # (B, k)
    bidx = jnp.arange(bsz)[:, None, None]
    adj_pooled = adj_edges_b[bidx, perm[:, :, None], perm[:, None, :]]  # (B, k, k)
    return x_out, adj_pooled, perm, score_perm


def sag_pooling_forward(x, edge_index, params, ratio=RATIO, multiplier=1.0):
    """Single-graph forward matching the PyTorch module's semantics."""
    n = x.shape[0]
    adj_edges = jnp.zeros((n, n), jnp.float32).at[edge_index[1], edge_index[0]].set(1.0)
    x_out, adj_pooled, perm, score_perm = sag_pooling_forward_batched(
        x[None], adj_edges[None], params, ratio=ratio, multiplier=multiplier)
    batch = jnp.zeros((perm.shape[1],), jnp.int32)
    # TODO(synk): filter_adj yields a variable-length edge_index; we return the
    # dense pooled adjacency A[perm][:, perm] (static shape, TPU friendly) instead.
    return x_out[0], adj_pooled[0], None, batch, perm[0], score_perm[0]


def init_params(key, c):
    ks = jax.random.split(key, 8)
    glorot = lambda k, shape: jax.random.normal(k, shape, jnp.float32) * jnp.sqrt(
        2.0 / (shape[0] + shape[1]))
    w1 = glorot(ks[0], (c, c))            # GATConv(in=C, out=C) weight
    asrc1 = glorot(ks[1], (c, 1))         # att_src (heads=1)
    adst1 = glorot(ks[2], (c, 1))         # att_dst
    b1 = jnp.zeros((1, c), jnp.float32)   # bias
    w2 = glorot(ks[3], (c, 1))            # GATConv(in=C, out=1) weight
    asrc2 = glorot(ks[4], (1, 1))
    adst2 = glorot(ks[5], (1, 1))
    b2 = jnp.zeros((1, 1), jnp.float32)
    return (w1, asrc1, adst1, b1, w2, asrc2, adst2, b2)


if __name__ == "__main__":
    key = jax.random.PRNGKey(0)
    kx, kp = jax.random.split(key)

    x_b = jax.random.normal(kx, (B, N, C), jnp.float32)

    # ring graph (both directions), shared topology across the batch
    src = jnp.arange(N, dtype=jnp.int32)
    dst = (src + 1) % N
    edge_index = jnp.concatenate(
        [jnp.stack([src, dst], axis=0), jnp.stack([dst, src], axis=0)], axis=1)  # (2, 2N)

    adj_edges = jnp.zeros((N, N), jnp.float32).at[edge_index[1], edge_index[0]].set(1.0)
    adj_edges_b = jnp.broadcast_to(adj_edges, (B, N, N))

    params = init_params(kp, C)

    # batched path: B graphs in one pallas_call (single grid step)
    out = sag_pooling_forward_batched(x_b, adj_edges_b, params)
    out = jax.tree_util.tree_map(jax.block_until_ready, out)
    x_out, adj_pooled, perm, score_perm = out

    k = int(math.ceil(RATIO * N))
    assert x_out.shape == (B, k, C)
    assert adj_pooled.shape == (B, k, k)
    assert perm.shape == (B, k)
    assert score_perm.shape == (B, k)

    # single-graph forward (module-parity API) must agree with batch element 0
    x1, adj1, _, batch1, perm1, sp1 = sag_pooling_forward(x_b[0], edge_index, params)
    assert x1.shape == (k, C) and batch1.shape == (k,)
    assert bool(jnp.all(perm1 == perm[0]))
    assert bool(jnp.allclose(x1, x_out[0], atol=1e-5, rtol=1e-5))
    assert bool(jnp.allclose(sp1, score_perm[0], atol=1e-5, rtol=1e-5))

    print("KERNEL_OK")
</pallas_src>

<mosaic_0001>
module attributes {stable_mosaic.version = 11 : i64} {
  func.func @sag_score_kernel(%arg0: i32, %arg1: memref<128x33xf32, #tpu.memory_space<vmem>>, %arg2: memref<128x128xi8, #tpu.memory_space<vmem>>, %arg3: memref<35x34xf32, #tpu.memory_space<vmem>>, %arg4: memref<3xf32, #tpu.memory_space<smem>>, %arg5: memref<128x33xf32, #tpu.memory_space<vmem>>) attributes {dimension_semantics = [#tpu.dimension_semantics<arbitrary>], iteration_bounds = array<i64: 1>, scalar_prefetch = 0 : i64, scratch_operands = 0 : i64, tpu.core_type = #tpu.core_type<tc>, window_params = [{pipeline_mode = #tpu.pipeline_mode<synchronous>, transform_indices = @transform_0, window_bounds = array<i64: 128, 33>}, {pipeline_mode = #tpu.pipeline_mode<synchronous>, transform_indices = @transform_1, window_bounds = array<i64: 128, 128>}, {pipeline_mode = #tpu.pipeline_mode<synchronous>, transform_indices = @transform_2, window_bounds = array<i64: 35, 34>}, {transform_indices = @transform_3, window_bounds = array<i64: 3>}, {pipeline_mode = #tpu.pipeline_mode<synchronous>, transform_indices = @transform_4, window_bounds = array<i64: 128, 33>}]} {
    %c0 = arith.constant 0 : index
    %c0_0 = arith.constant 0 : index
    %0 = vector.load %arg1[%c0, %c0_0] : memref<128x33xf32, #tpu.memory_space<vmem>>, vector<128x33xf32>
    %1 = tpu.iota {dimensions = array<i32: 0>} : vector<128x128xi32>
    %2 = tpu.iota {dimensions = array<i32: 1>} : vector<128x128xi32>
    %c0_1 = arith.constant 0 : index
    %c0_2 = arith.constant 0 : index
    %3 = vector.load %arg2[%c0_1, %c0_2] : memref<128x128xi8, #tpu.memory_space<vmem>>, vector<128x128xi8>
    %4 = arith.extsi %3 : vector<128x128xi8> to vector<128x128xi32>
    %c0_i32 = arith.constant 0 : i32
    %5 = vector.broadcast %c0_i32 : i32 to vector<128x128xi32>
    %6 = arith.cmpi sgt, %4, %5 : vector<128x128xi32>
    %7 = arith.cmpi eq, %1, %2 : vector<128x128xi32>
    %8 = arith.ori %6, %7 : vector<128x128xi1>
    %c0_3 = arith.constant 0 : index
    %c0_4 = arith.constant 0 : index
    %9 = vector.load %arg3[%c0_3, %c0_4] : memref<35x34xf32, #tpu.memory_space<vmem>>, vector<35x34xf32>
    %10 = vector.extract_strided_slice %9 {offsets = [0, 0], sizes = [33, 34], strides = [1, 1]} : vector<35x34xf32> to vector<33x34xf32>
    %11 = vector.extract_strided_slice %9 {offsets = [33, 0], sizes = [1, 32], strides = [1, 1]} : vector<35x34xf32> to vector<1x32xf32>
    %12 = vector.extract_strided_slice %9 {offsets = [34, 0], sizes = [1, 32], strides = [1, 1]} : vector<35x34xf32> to vector<1x32xf32>
    %c0_5 = arith.constant 0 : index
    %13 = memref.load %arg4[%c0_5] : memref<3xf32, #tpu.memory_space<smem>>
    %c1 = arith.constant 1 : index
    %14 = memref.load %arg4[%c1] : memref<3xf32, #tpu.memory_space<smem>>
    %c2 = arith.constant 2 : index
    %15 = memref.load %arg4[%c2] : memref<3xf32, #tpu.memory_space<smem>>
    %cst = arith.constant dense<0.000000e+00> : vector<128x34xf32>
    %16 = tpu.matmul %0, %10, %cst {dimension_numbers = #tpu.dot_dimension_numbers<[1], [0], [0], [1], [0, 0, 1, 1], [], []>} : vector<128x33xf32>, vector<33x34xf32>, vector<128x34xf32> -> vector<128x34xf32>
    %17 = vector.extract_strided_slice %16 {offsets = [0, 0], sizes = [128, 32], strides = [1, 1]} : vector<128x34xf32> to vector<128x32xf32>
    %18 = vector.extract_strided_slice %16 {offsets = [0, 32], sizes = [128, 1], strides = [1, 1]} : vector<128x34xf32> to vector<128x1xf32>
    %19 = vector.extract_strided_slice %16 {offsets = [0, 33], sizes = [128, 1], strides = [1, 1]} : vector<128x34xf32> to vector<128x1xf32>
    %20 = tpu.transpose %18, [1, 0] : vector<128x1xf32> -> vector<1x128xf32>
    %21 = vector.broadcast %19 : vector<128x1xf32> to vector<128x128xf32>
    %22 = vector.broadcast %20 : vector<1x128xf32> to vector<128x128xf32>
    %23 = arith.addf %21, %22 : vector<128x128xf32>
    %cst_6 = arith.constant 0.000000e+00 : f32
    %24 = vector.broadcast %cst_6 : f32 to vector<128x128xf32>
    %25 = arith.cmpf ogt, %23, %24 : vector<128x128xf32>
    %cst_7 = arith.constant 2.000000e-01 : f32
    %26 = vector.broadcast %cst_7 : f32 to vector<128x128xf32>
    %27 = arith.mulf %26, %23 : vector<128x128xf32>
    %28 = arith.select %25, %23, %27 : vector<128x128xi1>, vector<128x128xf32>
    %cst_8 = arith.constant -1.000000e+30 : f32
    %29 = vector.broadcast %cst_8 : f32 to vector<128x128xf32>
    %30 = arith.select %8, %28, %29 : vector<128x128xi1>, vector<128x128xf32>
    %cst_9 = arith.constant dense<0xFF800000> : vector<128xf32>
    %31 = vector.multi_reduction <maximumf>, %30, %cst_9 [1] : vector<128x128xf32> to vector<128xf32>
    %32 = vector.shape_cast %31 : vector<128xf32> to vector<128x1xf32>
    %33 = vector.broadcast %32 : vector<128x1xf32> to vector<128x128xf32>
    %34 = arith.subf %30, %33 : vector<128x128xf32>
    %35 = math.exp %34 : vector<128x128xf32>
    %cst_10 = arith.constant dense<0.000000e+00> : vector<128xf32>
    %36 = vector.multi_reduction <add>, %35, %cst_10 [1] : vector<128x128xf32> to vector<128xf32>
    %37 = vector.shape_cast %36 : vector<128xf32> to vector<128x1xf32>
    %38 = tpu.reciprocal %37 {approx = true} : vector<128x1xf32> -> vector<128x1xf32>
    %39 = vector.broadcast %38 : vector<128x1xf32> to vector<128x128xf32>
    %40 = arith.mulf %35, %39 : vector<128x128xf32>
    %cst_11 = arith.constant dense<0.000000e+00> : vector<128x32xf32>
    %41 = tpu.matmul %40, %17, %cst_11 {dimension_numbers = #tpu.dot_dimension_numbers<[1], [0], [0], [1], [0, 0, 1, 1], [], []>} : vector<128x128xf32>, vector<128x32xf32>, vector<128x32xf32> -> vector<128x32xf32>
    %42 = vector.broadcast %11 : vector<1x32xf32> to vector<128x32xf32>
    %43 = arith.addf %41, %42 : vector<128x32xf32>
    %cst_12 = arith.constant 0.000000e+00 : f32
    %44 = vector.broadcast %cst_12 : f32 to vector<128x32xf32>
    %45 = arith.maximumf %43, %44 : vector<128x32xf32>
    %46 = vector.broadcast %12 : vector<1x32xf32> to vector<128x32xf32>
    %47 = arith.mulf %45, %46 : vector<128x32xf32>
    %cst_13 = arith.constant dense<0.000000e+00> : vector<128xf32>
    %48 = vector.multi_reduction <add>, %47, %cst_13 [1] : vector<128x32xf32> to vector<128xf32>
    %49 = vector.shape_cast %48 : vector<128xf32> to vector<128x1xf32>
    %50 = vector.broadcast %14 : f32 to vector<128x1xf32>
    %51 = arith.mulf %50, %49 : vector<128x1xf32>
    %52 = vector.broadcast %13 : f32 to vector<128x1xf32>
    %53 = arith.mulf %52, %49 : vector<128x1xf32>
    %54 = tpu.transpose %53, [1, 0] : vector<128x1xf32> -> vector<1x128xf32>
    %55 = vector.broadcast %51 : vector<128x1xf32> to vector<128x128xf32>
    %56 = vector.broadcast %54 : vector<1x128xf32> to vector<128x128xf32>
    %57 = arith.addf %55, %56 : vector<128x128xf32>
    %cst_14 = arith.constant 0.000000e+00 : f32
    %58 = vector.broadcast %cst_14 : f32 to vector<128x128xf32>
    %59 = arith.cmpf ogt, %57, %58 : vector<128x128xf32>
    %cst_15 = arith.constant 2.000000e-01 : f32
    %60 = vector.broadcast %cst_15 : f32 to vector<128x128xf32>
    %61 = arith.mulf %60, %57 : vector<128x128xf32>
    %62 = arith.select %59, %57, %61 : vector<128x128xi1>, vector<128x128xf32>
    %cst_16 = arith.constant -1.000000e+30 : f32
    %63 = vector.broadcast %cst_16 : f32 to vector<128x128xf32>
    %64 = arith.select %8, %62, %63 : vector<128x128xi1>, vector<128x128xf32>
    %cst_17 = arith.constant dense<0xFF800000> : vector<128xf32>
    %65 = vector.multi_reduction <maximumf>, %64, %cst_17 [1] : vector<128x128xf32> to vector<128xf32>
    %66 = vector.shape_cast %65 : vector<128xf32> to vector<128x1xf32>
    %67 = vector.broadcast %66 : vector<128x1xf32> to vector<128x128xf32>
    %68 = arith.subf %64, %67 : vector<128x128xf32>
    %69 = math.exp %68 : vector<128x128xf32>
    %cst_18 = arith.constant dense<0.000000e+00> : vector<128xf32>
    %70 = vector.multi_reduction <add>, %69, %cst_18 [1] : vector<128x128xf32> to vector<128xf32>
    %71 = vector.shape_cast %70 : vector<128xf32> to vector<128x1xf32>
    %72 = tpu.reciprocal %71 {approx = true} : vector<128x1xf32> -> vector<128x1xf32>
    %73 = vector.broadcast %72 : vector<128x1xf32> to vector<128x128xf32>
    %74 = arith.mulf %69, %73 : vector<128x128xf32>
    %75 = tpu.transpose %49, [1, 0] : vector<128x1xf32> -> vector<1x128xf32>
    %76 = vector.broadcast %75 : vector<1x128xf32> to vector<128x128xf32>
    %77 = arith.mulf %74, %76 : vector<128x128xf32>
    %cst_19 = arith.constant dense<0.000000e+00> : vector<128xf32>
    %78 = vector.multi_reduction <add>, %77, %cst_19 [1] : vector<128x128xf32> to vector<128xf32>
    %79 = vector.shape_cast %78 : vector<128xf32> to vector<128x1xf32>
    %80 = vector.broadcast %15 : f32 to vector<128x1xf32>
    %81 = arith.addf %79, %80 : vector<128x1xf32>
    %cst_20 = arith.constant 0.000000e+00 : f32
    %82 = vector.broadcast %cst_20 : f32 to vector<128x1xf32>
    %83 = arith.maximumf %81, %82 : vector<128x1xf32>
    %84 = math.tanh %83 : vector<128x1xf32>
    %85 = vector.broadcast %84 : vector<128x1xf32> to vector<128x33xf32>
    %86 = arith.mulf %0, %85 : vector<128x33xf32>
    %c0_21 = arith.constant 0 : index
    %c0_22 = arith.constant 0 : index
    %87 = vector.load %arg5[%c0_21, %c0_22] : memref<128x33xf32, #tpu.memory_space<vmem>>, vector<128x33xf32>
    tpu.vector_store %arg5[%c0_21, %c0_22], %86 {strides = array<i32>} : memref<128x33xf32, #tpu.memory_space<vmem>>, vector<128x33xf32>,
    return
  }
  func.func @transform_0(%arg0: i32) -> (i32, i32) {
    %c0_i32 = arith.constant 0 : i32
    %c0_i32_0 = arith.constant 0 : i32
    %c0_i32_1 = arith.constant 0 : i32
    return %c0_i32, %c0_i32_0 : i32, i32
  }
  func.func @transform_1(%arg0: i32) -> (i32, i32) {
    %c0_i32 = arith.constant 0 : i32
    %c0_i32_0 = arith.constant 0 : i32
    %c0_i32_1 = arith.constant 0 : i32
    return %c0_i32, %c0_i32_0 : i32, i32
  }
  func.func @transform_2(%arg0: i32) -> (i32, i32) {
    %c0_i32 = arith.constant 0 : i32
    %c0_i32_0 = arith.constant 0 : i32
    %c0_i32_1 = arith.constant 0 : i32
    return %c0_i32, %c0_i32_0 : i32, i32
  }
  func.func @transform_3(%arg0: i32) -> i32 {
    %c0_i32 = arith.constant 0 : i32
    %c0_i32_0 = arith.constant 0 : i32
    return %c0_i32 : i32
  }
  func.func @transform_4(%arg0: i32) -> (i32, i32) {
    %c0_i32 = arith.constant 0 : i32
    %c0_i32_0 = arith.constant 0 : i32
    %c0_i32_1 = arith.constant 0 : i32
    return %c0_i32, %c0_i32_0 : i32, i32
  }
}

</mosaic_0001>

<bundles_post_ra>
// kernel: neg.1
= control target key start
LH: loop header
LB: loop body
LE: loop exit
PB: predicated region body
PF: predicated region fallthrough
CT: control target
= control target key end

     0   :  { %s24_s0 = inlined_call_operand.vmem [shape: f32[8,16], index: 0, kind: input, shape index: {}]   ;;  %s25_s1 = inlined_call_operand.vmem [shape: f32[8,16], index: 1, kind: output, shape index: {}]  }
   0x1   :  { %v2_v0 = vld [vmem:[%s24_s0] sm:$0xff] }
   0x2   :  { %v5_v1 = vxor.u32 2147483648, %v2_v0 }
   0x4   :  { %7 = vst [vmem:[%s25_s1] sm:$0xff] %v5_v1 }

// kernel: sag_pooling_forward_batched.1
= control target key start
LH: loop header
LB: loop body
LE: loop exit
PB: predicated region body
PF: predicated region fallthrough
CT: control target
= control target key end

     0   :  { %9 = vsyncpa [#allocation3], 0  ;;  %s2848_s0 = inlined_call_operand.vmem [shape: f32[128,33], index: 0, kind: input, shape index: {}]   ;;  %s2849_s1 = inlined_call_operand.vmem [shape: s8[128,128], index: 1, kind: input, shape index: {}]   ;;  %s2850_s2 = inlined_call_operand.vmem [shape: f32[35,34], index: 2, kind: input, shape index: {}]   ;;  %s2851_s3 = inlined_call_operand.vmem [shape: f32[3], index: 3, kind: input, shape index: {}]   ;;  %s2852_s4 = inlined_call_operand.vmem [shape: f32[128,33], index: 4, kind: output, shape index: {}]  }
   0x1   :  { %s22_s17 = sshll.u32 %s2851_s3, 4  ;;  %s23_s17 = int_to_ptr.vmem [resolvable:$true] %s22_s17 }
   0x2   :  { %s1801_s18 = scalar_lea.vmem %s23_s17, 16  ;;  %p1806_p1 = scmp.lt.s32.totalorder %s23_s17, %s23_s17 }
   0x3   :  { %p1802_p0 = scmp.ne.s32.totalorder %s23_s17, %s1801_s18  ;;  %p1807_p2 = scmp.lt.s32.totalorder %s1801_s18, %s1801_s18 }
   0x5   :  { %p1808_p3 = por %p1807_p2, %p1806_p1 }
   0x7   :  { %p1809_p4 = pnand %p1808_p3, %p1802_p0 }
   0x9   :  { %1812 = shalt.err (!%p1809_p4)
}
   0xa   :  { %s1815_s19 = smov [#allocation2]  }
   0xb   :  { %25 = dma.vmem_to_smem %s23_s17, 16, %s1815_s19, [#allocation3]  }
   0xc   :  { %1813 = dma.done.wait [#allocation3], 16  }
   0xd   :  { %1814 = vsyncadd [#allocation3], 4294967280 }
   0xe   :  { %29 = sfence }
   0xf   :  { %v137_v0 = vld [vmem:[%s2850_s2 + $0x20] sm:$0x7]  ;;  %vm190_vm0 = vcmask 1040384   ;;  %v136_v1 = vld [vmem:[%s2850_s2 + $0x18] sm:$0xff]  ;;  %vm2853_vm1 = vcmask 269312   ;;  %v135_v3 = vld [vmem:[%s2850_s2 + $0x10] sm:$0xff]  ;;  %v46_v61 = vlaneseq }
  0x10   :  { %1497 = vmatprep.subr.msk.mxu0 %vm190_vm0, %v137_v0  ;;  %v30_v2 = vld [vmem:[%s2848_s0] sm:$0xff]  ;;  %v1816_v4 = vmov 33   ;;  %v134_v5 = vld [vmem:[%s2850_s2 + $0x8] sm:$0xff]  ;;  %v32_v8 = vld [vmem:[%s2848_s0 + $0x10] sm:$0xff]  ;;  %s1817_s8 = smov 96   ;;  %s1425_s18 = sld [smem:[#allocation2 + $0x1]] }
  0x11   :  { %1498 = vmatpush3.msk.msra.mxu0 %vm190_vm0, %v137_v0  ;;  %1507 = vmatprep.mubr.msk.f32.mxu0 %vm2853_vm1, %v30_v2  ;;  %v133_v6 = vld [vmem:[%s2850_s2] sm:$0xff]  ;;  %v31_v7 = vld [vmem:[%s2848_s0 + $0x8] sm:$0xff]  ;;  %v33_v9 = vld [vmem:[%s2848_s0 + $0x18] sm:$0xff]  ;;  %v2063_v63 = vshrl.u32 %v46_v61, 7  ;;  %s1426_s19 = sld [smem:[#allocation2 + $0x2]] }
  0x12   :  { %1499 = vmatprep.subr.mxu0 %v136_v1  ;;  %1622 = vset.pattern.permute.xlu1 %v1816_v4  ;;  %v34_v10 = vld [vmem:[%s2848_s0 + $0x20] sm:$0xff]  ;;  %v35_v11 = vld [vmem:[%s2848_s0 + $0x28] sm:$0xff]  ;;  %v36_v12 = vld [vmem:[%s2848_s0 + $0x30] sm:$0xff] }
  0x13   :  { %1500 = vmatpush3.msra.mxu0 %v136_v1  ;;  %1623 = vset.pattern.permute.xlu0 %v1816_v4  ;;  %v37_v13 = vld [vmem:[%s2848_s0 + $0x38] sm:$0xff]  ;;  %v38_v14 = vld [vmem:[%s2848_s0 + $0x40] sm:$0xff]  ;;  %v39_v15 = vld [vmem:[%s2848_s0 + $0x48] sm:$0xff]  ;;  %v2071_v2 = vsub.s32 0, %v2063_v63 }
  0x14   :  { %1501 = vmatprep.subr.mxu0 %v135_v3  ;;  %v40_v16 = vld [vmem:[%s2848_s0 + $0x50] sm:$0xff]  ;;  %v41_v17 = vld [vmem:[%s2848_s0 + $0x58] sm:$0xff]  ;;  %v42_v18 = vld [vmem:[%s2848_s0 + $0x60] sm:$0xff] }
  0x15   :  { %1502 = vmatpush3.msra.mxu0 %v135_v3  ;;  %v43_v19 = vld [vmem:[%s2848_s0 + $0x68] sm:$0xff]  ;;  %v44_v20 = vld [vmem:[%s2848_s0 + $0x70] sm:$0xff]  ;;  %v45_v21 = vld [vmem:[%s2848_s0 + $0x78] sm:$0xff]  ;;  %v2073_v3 = vand.u32 127, %v46_v61 }
  0x16   :  { %1503 = vmatprep.subr.mxu0 %v134_v5  ;;  %v65_v0 = vld [vmem:[%s2849_s1] sm:$0xff] }
  0x17   :  { %1504 = vmatpush3.msra.mxu0 %v134_v5  ;;  %v69_v4 = vunpack.c.0.s8 %v65_v0  ;;  %vm101_vm3 = vcmp.eq.s32.totalorder %v2063_v63, %v2073_v3 }
  0x18   :  { %1505 = vmatprep.subr.mxu0 %v133_v6 }
  0x19   :  { %1506 = vmatpush3.msra.mxu0 %v133_v6  ;;  %v70_v6 = vunpack.c.1.s8 %v65_v0  ;;  %vm85_vm2 = vcmp.gt.s32.totalorder %v69_v4, 0 }
  0x1a   :  { %1508 = vmatmul.mubr.msk.f32.vlgmr.msra.gmra.mxu0 %vm2853_vm1, %v31_v7  ;;  %vm2083_vm5 = vmor %vm85_vm2, %vm101_vm3 }
  0x1b   :  { %1510 = vmatprep.mubr.msk.f32.mxu0 %vm2853_vm1, %v32_v8  ;;  %v48_v8 = vadd.s32 8, %v2063_v63  ;;  %vm86_vm4 = vcmp.gt.s32.totalorder %v70_v6, 0 }
  0x1d   :  { %vm102_vm7 = vcmp.eq.s32.totalorder %v48_v8, %v2073_v3 }
  0x1e   :  { %1511 = vmatmul.mubr.msk.f32.gmra.mxu0 %vm2853_vm1, %v33_v9  ;;  %vm2095_vm9 = vmor %vm86_vm4, %vm102_vm7 }
  0x1f   :  { %1513 = vmatprep.mubr.msk.f32.mxu0 %vm2853_vm1, %v34_v10 }
  0x22   :  { %1514 = vmatmul.mubr.msk.f32.gmra.mxu0 %vm2853_vm1, %v35_v11 }
  0x23   :  { %1516 = vmatprep.mubr.msk.f32.mxu0 %vm2853_vm1, %v36_v12 }
  0x26   :  { %1517 = vmatmul.mubr.msk.f32.gmra.mxu0 %vm2853_vm1, %v37_v13 }
  0x27   :  { %1519 = vmatprep.mubr.msk.f32.mxu0 %vm2853_vm1, %v38_v14 }
  0x2a   :  { %1520 = vmatmul.mubr.msk.f32.gmra.mxu0 %vm2853_vm1, %v39_v15  ;;  %v49_v15 = vadd.s32 16, %v2063_v63 }
  0x2b   :  { %1522 = vmatprep.mubr.msk.f32.mxu0 %vm2853_vm1, %v40_v16  ;;  %v71_v16 = vunpack.c.2.s8 %v65_v0 }
  0x2c   :  { %vm103_vm11 = vcmp.eq.s32.totalorder %v49_v15, %v2073_v3 }
  0x2d   :  { %vm87_vm10 = vcmp.gt.s32.totalorder %v71_v16, 0  ;;  %v2876_v16 = vmov 0 }
  0x2e   :  { %1523 = vmatmul.mubr.msk.f32.gmra.mxu0 %vm2853_vm1, %v41_v17  ;;  %vm2111_vm13 = vmor %vm87_vm10, %vm103_vm11 }
  0x2f   :  { %1525 = vmatprep.mubr.msk.f32.mxu0 %vm2853_vm1, %v42_v18 }
  0x32   :  { %1526 = vmatmul.mubr.msk.f32.gmra.mxu0 %vm2853_vm1, %v43_v19 }
  0x33   :  { %1528 = vmatprep.mubr.msk.f32.mxu0 %vm2853_vm1, %v44_v20 }
  0x36   :  { %1529 = vmatmul.mubr.msk.f32.gmra.mxu0 %vm2853_vm1, %v45_v21 }
  0xda   :  { %v1925_v22 = vpop.f32.mrf.mxu0 }
  0xdb   :  { %440 = vperm.xlu1 %1622, %v1925_v22   ;;  %357 = vrot.lane.b32.xlu0 %v1925_v22, %s1817_s8 }
  0xdc   :  { %v1930_v23 = vpop.f32.mrf.mxu0 }
  0xde   :  { %v1932_v24 = vpop.f32.mrf.mxu0 }
  0xdf   :  { %355 = vrot.lane.b32.xlu0 %v1930_v23, %s1817_s8  ;;  %361 = vrot.lane.b32.xlu1 %v1932_v24, %s1817_s8 }
  0xe0   :  { %v1938_v25 = vpop.f32.mrf.mxu0 }
  0xe2   :  { %v1940_v26 = vpop.f32.mrf.mxu0 }
  0xe3   :  { %436 = vperm.xlu0 %1623, %v1930_v23   ;;  %359 = vrot.lane.b32.xlu1 %v1938_v25, %s1817_s8 }
  0xe4   :  { %v1945_v27 = vpop.f32.mrf.mxu0 }
  0xe6   :  { %v1518_v28 = vpop.f32.mrf.mxu0 }
  0xe7   :  { %448 = vperm.xlu0 %1623, %v1932_v24   ;;  %444 = vperm.xlu1 %1622, %v1938_v25  }
  0xe8   :  { %v1949_v29 = vpop.f32.mrf.mxu0 }
  0xea   :  { %v1951_v30 = vpop.f32.mrf.mxu0 }
  0xeb   :  { %365 = vrot.lane.b32.xlu1 %v1940_v26, %s1817_s8  ;;  %363 = vrot.lane.b32.xlu0 %v1945_v27, %s1817_s8 }
  0xec   :  { %v300_v31 = vpop.f32.mrf.mxu0 }
  0xee   :  { %v1957_v32 = vpop.f32.mrf.mxu0 }
  0xef   :  { %452 = vperm.xlu1 %1622, %v1945_v27   ;;  %367 = vrot.lane.b32.xlu0 %v1949_v29, %s1817_s8 }
  0xf0   :  { %v1962_v33 = vpop.f32.mrf.mxu0 }
  0xf2   :  { %v1964_v34 = vpop.f32.mrf.mxu0 }
  0xf3   :  { %369 = vrot.lane.b32.xlu1 %v1518_v28, %s1817_s8  ;;  %371 = vrot.lane.b32.xlu0 %v300_v31, %s1817_s8 }
  0xf4   :  { %v1968_v35 = vpop.f32.mrf.mxu0 }
  0xf6   :  { %v1970_v36 = vpop.f32.mrf.mxu0 }
  0xf7   :  { %373 = vrot.lane.b32.xlu1 %v1951_v30, %s1817_s8  ;;  %375 = vrot.lane.b32.xlu0 %v1962_v33, %s1817_s8 }
  0xf8   :  { %1531 = vmatprep.subr.mxu0 %v1970_v36  ;;  %1587 = vmatprep.subr.mxu1 %v1970_v36  ;;  %v1978_v37 = vpop.f32.mrf.mxu0 }
  0xf9   :  { %1532 = vmatpush3.msra.mxu0 %v1970_v36  ;;  %1603 = vmatpush3.msra.mxu1 %v1970_v36 }
  0xfa   :  { %1533 = vmatprep.subr.mxu0 %v1978_v37  ;;  %1588 = vmatprep.subr.mxu1 %v1978_v37 }
  0xfb   :  { %1534 = vmatpush3.msra.mxu0 %v1978_v37  ;;  %1604 = vmatpush3.msra.mxu1 %v1978_v37 }
  0xfc   :  { %377 = vrot.lane.b32.xlu1 %v1957_v32, %s1817_s8  ;;  %379 = vrot.lane.b32.xlu0 %v1968_v35, %s1817_s8 }
  0xfd   :  { %1535 = vmatprep.subr.mxu0 %v1964_v34  ;;  %1589 = vmatprep.subr.mxu1 %v1964_v34 }
  0xfe   :  { %1536 = vmatpush3.msra.mxu0 %v1964_v34  ;;  %1605 = vmatpush3.msra.mxu1 %v1964_v34 }
  0xff   :  { %1537 = vmatprep.subr.mxu0 %v1968_v35  ;;  %1590 = vmatprep.subr.mxu1 %v1968_v35 }
 0x100   :  { %1538 = vmatpush3.msra.mxu0 %v1968_v35  ;;  %1606 = vmatpush3.msra.mxu1 %v1968_v35 }
 0x101   :  { %381 = vrot.lane.b32.xlu1 %v1964_v34, %s1817_s8  ;;  %383 = vrot.lane.b32.xlu0 %v1978_v37, %s1817_s8 }
 0x102   :  { %1539 = vmatprep.subr.mxu0 %v1957_v32  ;;  %1591 = vmatprep.subr.mxu1 %v1957_v32 }
 0x103   :  { %1540 = vmatpush3.msra.mxu0 %v1957_v32  ;;  %1607 = vmatpush3.msra.mxu1 %v1957_v32 }
 0x104   :  { %1541 = vmatprep.subr.mxu0 %v1962_v33  ;;  %1592 = vmatprep.subr.mxu1 %v1962_v33 }
 0x105   :  { %1542 = vmatpush3.msra.mxu0 %v1962_v33  ;;  %1608 = vmatpush3.msra.mxu1 %v1962_v33 }
 0x106   :  { %385 = vrot.lane.b32.xlu1 %v1970_v36, %s1817_s8  ;;  %456 = vperm.xlu0 %1623, %v1940_v26  }
 0x107   :  { %1543 = vmatprep.subr.mxu0 %v1951_v30  ;;  %1593 = vmatprep.subr.mxu1 %v1951_v30 }
 0x108   :  { %1544 = vmatpush3.msra.mxu0 %v1951_v30  ;;  %1609 = vmatpush3.msra.mxu1 %v1951_v30 }
 0x109   :  { %1545 = vmatprep.subr.mxu0 %v300_v31  ;;  %1594 = vmatprep.subr.mxu1 %v300_v31 }
 0x10a   :  { %1546 = vmatpush3.msra.mxu0 %v300_v31  ;;  %1610 = vmatpush3.msra.mxu1 %v300_v31 }
 0x10b   :  { %460 = vperm.xlu1 %1622, %v1949_v29   ;;  %464 = vperm.xlu0 %1623, %v1518_v28  }
 0x10c   :  { %1547 = vmatprep.subr.mxu0 %v1518_v28  ;;  %1595 = vmatprep.subr.mxu1 %v1518_v28 }
 0x10d   :  { %1548 = vmatpush3.msra.mxu0 %v1518_v28  ;;  %1611 = vmatpush3.msra.mxu1 %v1518_v28 }
 0x10e   :  { %1549 = vmatprep.subr.mxu0 %v1949_v29  ;;  %1596 = vmatprep.subr.mxu1 %v1949_v29 }
 0x10f   :  { %1550 = vmatpush3.msra.mxu0 %v1949_v29  ;;  %1612 = vmatpush3.msra.mxu1 %v1949_v29 }
 0x110   :  { %468 = vperm.xlu1 %1622, %v300_v31   ;;  %472 = vperm.xlu0 %1623, %v1951_v30   ;;  %v51_v30 = vadd.s32 32, %v2063_v63 }
 0x111   :  { %1551 = vmatprep.subr.mxu0 %v1940_v26  ;;  %1597 = vmatprep.subr.mxu1 %v1940_v26 }
 0x112   :  { %1552 = vmatpush3.msra.mxu0 %v1940_v26  ;;  %1613 = vmatpush3.msra.mxu1 %v1940_v26  ;;  %vm105_vm4 = vcmp.eq.s32.totalorder %v51_v30, %v2073_v3 }
 0x113   :  { %1553 = vmatprep.subr.mxu0 %v1945_v27  ;;  %1598 = vmatprep.subr.mxu1 %v1945_v27 }
 0x114   :  { %1554 = vmatpush3.msra.mxu0 %v1945_v27  ;;  %1614 = vmatpush3.msra.mxu1 %v1945_v27 }
 0x115   :  { %476 = vperm.xlu1 %1622, %v1962_v33   ;;  %480 = vperm.xlu0 %1623, %v1957_v32  }
 0x116   :  { %1555 = vmatprep.subr.mxu0 %v1932_v24  ;;  %1599 = vmatprep.subr.mxu1 %v1932_v24 }
 0x117   :  { %1556 = vmatpush3.msra.mxu0 %v1932_v24  ;;  %1615 = vmatpush3.msra.mxu1 %v1932_v24  ;;  %v72_v24 = vunpack.c.3.s8 %v65_v0  ;;  %v55_v0 = vadd.s32 64, %v2063_v63 }
 0x118   :  { %1557 = vmatprep.subr.mxu0 %v1938_v25  ;;  %1600 = vmatprep.subr.mxu1 %v1938_v25 }
 0x119   :  { %1558 = vmatpush3.msra.mxu0 %v1938_v25  ;;  %1616 = vmatpush3.msra.mxu1 %v1938_v25  ;;  %v66_v25 = vld [vmem:[%s2849_s1 + $0x8] sm:$0xff]  ;;  %vm88_vm14 = vcmp.gt.s32.totalorder %v72_v24, 0 }
 0x11a   :  { %484 = vperm.xlu1 %1622, %v1968_v35   ;;  %488 = vperm.xlu0 %1623, %v1964_v34   ;;  %v73_v32 = vunpack.c.0.s8 %v66_v25 }
 0x11b   :  { %1559 = vmatprep.subr.mxu0 %v1925_v22  ;;  %1601 = vmatprep.subr.mxu1 %v1925_v22 }
 0x11c   :  { %1560 = vmatpush3.msra.mxu0 %v1925_v22  ;;  %1617 = vmatpush3.msra.mxu1 %v1925_v22  ;;  %v50_v22 = vadd.s32 24, %v2063_v63  ;;  %vm89_vm3 = vcmp.gt.s32.totalorder %v73_v32, 0 }
 0x11d   :  { %1561 = vmatprep.subr.mxu0 %v1930_v23  ;;  %1602 = vmatprep.subr.mxu1 %v1930_v23  ;;  %vm2136_vm7 = vmor %vm89_vm3, %vm105_vm4 }
 0x11e   :  { %1562 = vmatpush3.msra.mxu0 %v1930_v23  ;;  %1618 = vmatpush3.msra.mxu1 %v1930_v23  ;;  %vm104_vm15 = vcmp.eq.s32.totalorder %v50_v22, %v2073_v3 }
 0x11f   :  { %492 = vperm.xlu0 %1623, %v1978_v37   ;;  %vm2124_vm2 = vmor %vm88_vm14, %vm104_vm15 }
 0x123   :  { %496 = vperm.xlu0 %1623, %v1970_v36  }
 0x14d   :  { %v358_v38 = vpop.permute.xlu0 %357 }
 0x151   :  { %v356_v39 = vpop.permute.xlu0 %355 }
 0x152   :  { %403 = vxpose.xlu1.b32.start [1/16] (narrow) %v356_v39, 8 }
 0x156   :  { %v441_v40 = vpop.permute.xlu1 %440  ;;  %404 = vxpose.xlu1.b32.cont [2/16] (narrow) %v358_v38, 8  ;;  %v74_v38 = vunpack.c.1.s8 %v66_v25 }
 0x15a   :  { %v362_v41 = vpop.permute.xlu1 %361 }
 0x15e   :  { %v437_v42 = vpop.permute.xlu0 %436  ;;  %v360_v43 = vpop.permute.xlu1 %359 }
 0x15f   :  { %405 = vxpose.xlu1.b32.cont [3/16] (narrow) %v360_v43, 8 }
 0x162   :  { %v2053_v44 = vpop.permute.xlu0 %448  ;;  %v445_v45 = vpop.permute.xlu1 %444 }
 0x163   :  { %406 = vxpose.xlu1.b32.cont [4/16] (narrow) %v362_v41, 8 }
 0x166   :  { %v366_v46 = vpop.permute.xlu1 %365  ;;  %v364_v47 = vpop.permute.xlu0 %363 }
 0x167   :  { %407 = vxpose.xlu1.b32.cont [5/16] (narrow) %v364_v47, 8  ;;  %v75_v47 = vunpack.c.2.s8 %v66_v25 }
 0x169   :  { %vm91_vm14 = vcmp.gt.s32.totalorder %v75_v47, 0  ;;  %v2882_v47 = vmov 0 }
 0x16a   :  { %v2055_v48 = vpop.permute.xlu1 %452  ;;  %v368_v49 = vpop.permute.xlu0 %367 }
 0x16b   :  { %408 = vxpose.xlu1.b32.cont [6/16] (narrow) %v366_v46, 8  ;;  %v53_v46 = vadd.s32 48, %v2063_v63 }
 0x16d   :  { %vm107_vm15 = vcmp.eq.s32.totalorder %v53_v46, %v2073_v3 }
 0x16e   :  { %v370_v50 = vpop.permute.xlu1 %369  ;;  %v372_v51 = vpop.permute.xlu0 %371  ;;  %vm2164_vm3 = vmor %vm91_vm14, %vm107_vm15  ;;  %vm109_vm14 = vcmp.eq.s32.totalorder %v55_v0, %v2073_v3 }
 0x16f   :  { %409 = vxpose.xlu1.b32.cont [7/16] (narrow) %v368_v49, 8 }
 0x172   :  { %v374_v52 = vpop.permute.xlu1 %373  ;;  %v376_v53 = vpop.permute.xlu0 %375 }
 0x173   :  { %410 = vxpose.xlu1.b32.cont [8/16] (narrow) %v370_v50, 8 }
 0x176   :  { %v378_v54 = vpop.permute.xlu1 %377  ;;  %v380_v55 = vpop.permute.xlu0 %379 }
 0x177   :  { %411 = vxpose.xlu1.b32.cont [9/16] (narrow) %v372_v51, 8 }
 0x17a   :  { %v382_v56 = vpop.permute.xlu1 %381  ;;  %v384_v57 = vpop.permute.xlu0 %383 }
 0x17b   :  { %412 = vxpose.xlu1.b32.cont [10/16] (narrow) %v374_v52, 8 }
 0x17e   :  { %v386_v58 = vpop.permute.xlu1 %385 }
 0x17f   :  { %413 = vxpose.xlu1.b32.cont [11/16] (narrow) %v376_v53, 8  ;;  %v54_v53 = vadd.s32 56, %v2063_v63 }
 0x181   :  { %v457_v33 = vpop.permute.xlu0 %456 }
 0x183   :  { %414 = vxpose.xlu1.b32.cont [12/16] (narrow) %v378_v54, 8 }
 0x186   :  { %v2057_v59 = vpop.permute.xlu1 %460 }
 0x187   :  { %415 = vxpose.xlu1.b32.cont [13/16] (narrow) %v380_v55, 8  ;;  %v76_v55 = vunpack.c.3.s8 %v66_v25 }
 0x189   :  { %vm92_vm4 = vcmp.gt.s32.totalorder %v76_v55, 0 }
 0x18b   :  { %416 = vxpose.xlu1.b32.cont [14/16] (narrow) %v382_v56, 8  ;;  %v2059_v60 = vpop.permute.xlu1 %468  ;;  %v67_v56 = vld [vmem:[%s2849_s1 + $0x10] sm:$0xff] }
 0x18c   :  { %v79_v24 = vunpack.c.2.s8 %v67_v56  ;;  %v80_v32 = vunpack.c.3.s8 %v67_v56 }
 0x18f   :  { %417 = vxpose.xlu1.b32.cont [15/16] (narrow) %v384_v57, 8 }
 0x190   :  { %v2061_v62 = vpop.permute.xlu1 %476 }
 0x193   :  { %418 = vxpose.xlu1.b32.end [16/16] (narrow) %v386_v58, 8 }
 0x195   :  { %v2068_v1 = vpop.permute.xlu1 %484 }
 0x1d3   :  { %v419_v5 = vpop.trf.xlu1 }
 0x1d4   :  { %v2076_v7 = vrot.slane %v419_v5, %v2071_v2  ;;  %v77_v5 = vunpack.c.0.s8 %v67_v56 }
 0x1d6   :  { %v503_v9 = vadd.f32 %v2076_v7, %v437_v42  ;;  %v504_v10 = vadd.f32 %v2076_v7, %v441_v40  ;;  %v505_v14 = vadd.f32 %v2076_v7, %v445_v45  ;;  %v506_v23 = vadd.f32 %v2076_v7, %v2053_v44 }
 0x1d7   :  { %v507_v31 = vadd.f32 %v2076_v7, %v2055_v48  ;;  %v508_v39 = vadd.f32 %v2076_v7, %v457_v33  ;;  %v52_v40 = vadd.s32 40, %v2063_v63  ;;  %v509_v45 = vadd.f32 %v2076_v7, %v2057_v59  ;;  %v465_v48 = vpop.permute.xlu0 %464  ;;  %v68_v33 = vld [vmem:[%s2849_s1 + $0x18] sm:$0xff] }
 0x1d8   :  { %vm519_vm6 = vcmp.gt.f32.partialorder %v503_v9, 0.0  ;;  %v535_v12 = vmul.f32 0.2, %v503_v9  ;;  %v536_v13 = vmul.f32 0.2, %v504_v10  ;;  %vm520_vm8 = vcmp.gt.f32.partialorder %v504_v10, 0.0 }
 0x1d9   :  { %v537_v21 = vmul.f32 0.2, %v505_v14  ;;  %vm521_vm12 = vcmp.gt.f32.partialorder %v505_v14, 0.0  ;;  %v538_v29 = vmul.f32 0.2, %v506_v23  ;;  %vm522_vm0 = vcmp.gt.f32.partialorder %v506_v23, 0.0 }
 0x1da   :  { %v551_v17 = vsel %vm519_vm6, %v503_v9, %v535_v12  ;;  %v552_v20 = vsel %vm520_vm8, %v504_v10, %v536_v13  ;;  %v539_v37 = vmul.f32 0.2, %v507_v31  ;;  %vm523_vm6 = vcmp.gt.f32.partialorder %v507_v31, 0.0 }
 0x1db   :  { %v2092_v18 = vsel %vm2083_vm5, %v551_v17, -1e+30  ;;  %v2108_v26 = vsel %vm2095_vm9, %v552_v20, -1e+30  ;;  %v553_v28 = vsel %vm521_vm12, %v505_v14, %v537_v21  ;;  %v554_v36 = vsel %vm522_vm0, %v506_v23, %v538_v29  ;;  %v473_v6 = vpop.permute.xlu0 %472 }
 0x1dc   :  { %583 = vmax.xlane.f32.xlu0 %v2092_v18  ;;  %v2121_v34 = vsel %vm2111_vm13, %v553_v28, -1e+30  ;;  %v2133_v41 = vsel %vm2124_vm2, %v554_v36, -1e+30  ;;  %v555_v43 = vsel %vm523_vm6, %v507_v31, %v539_v37  ;;  %vm90_vm8 = vcmp.gt.s32.totalorder %v74_v38, 0 }
 0x1dd   :  { %v540_v44 = vmul.f32 0.2, %v508_v39  ;;  %vm106_vm10 = vcmp.eq.s32.totalorder %v52_v40, %v2073_v3  ;;  %vm524_vm11 = vcmp.gt.f32.partialorder %v508_v39, 0.0  ;;  %v2146_v49 = vsel %vm2136_vm7, %v555_v43, -1e+30 }
 0x1de   :  { %vm2149_vm12 = vmor %vm90_vm8, %vm106_vm10  ;;  %v541_v52 = vmul.f32 0.2, %v509_v45  ;;  %v510_v54 = vadd.f32 %v2076_v7, %v465_v48  ;;  %vm525_vm0 = vcmp.gt.f32.partialorder %v509_v45, 0.0  ;;  %v511_v4 = vadd.f32 %v2076_v7, %v2059_v60 }
 0x1df   :  { %v556_v51 = vsel %vm524_vm11, %v508_v39, %v540_v44  ;;  %vm108_vm6 = vcmp.eq.s32.totalorder %v54_v53, %v2073_v3  ;;  %v78_v13 = vunpack.c.1.s8 %v67_v56  ;;  %v512_v60 = vadd.f32 %v2076_v7, %v473_v6  ;;  %v481_v22 = vpop.permute.xlu0 %480 }
 0x1e0   :  { %585 = vmax.xlane.f32.xlu0 %v2108_v26  ;;  %v2161_v57 = vsel %vm2149_vm12, %v556_v51, -1e+30  ;;  %v557_v59 = vsel %vm525_vm0, %v509_v45, %v541_v52  ;;  %v542_v61 = vmul.f32 0.2, %v510_v54  ;;  %vm526_vm8 = vcmp.gt.f32.partialorder %v510_v54, 0.0  ;;  %vm2177_vm10 = vmor %vm92_vm4, %vm108_vm6 }
 0x1e1   :  { %v2174_v8 = vsel %vm2164_vm3, %v557_v59, -1e+30  ;;  %v543_v12 = vmul.f32 0.2, %v511_v4  ;;  %vm93_vm11 = vcmp.gt.s32.totalorder %v77_v5, 0  ;;  %vm527_vm15 = vcmp.gt.f32.partialorder %v511_v4, 0.0 }
 0x1e2   :  { %v558_v10 = vsel %vm526_vm8, %v510_v54, %v542_v61  ;;  %v56_v14 = vadd.s32 72, %v2063_v63  ;;  %vm2189_vm0 = vmor %vm93_vm11, %vm109_vm14  ;;  %vm94_vm4 = vcmp.gt.s32.totalorder %v78_v13, 0  ;;  %v544_v20 = vmul.f32 0.2, %v512_v60 }
 0x1e3   :  { %v2186_v15 = vsel %vm2177_vm10, %v558_v10, -1e+30  ;;  %v2877_v16 = vsel %vm2189_vm0, 4294967295, %v2876_v16  ;;  %v559_v17 = vsel %vm527_vm15, %v511_v4, %v543_v12  ;;  %v513_v21 = vadd.f32 %v2076_v7, %v2061_v62  ;;  %v489_v36 = vpop.permute.xlu0 %488 }
 0x1e4   :  { %587 = vmax.xlane.f32.xlu0 %v2121_v34  ;;  %vm110_vm6 = vcmp.eq.s32.totalorder %v56_v14, %v2073_v3  ;;  %vm528_vm8 = vcmp.gt.f32.partialorder %v512_v60, 0.0  ;;  %v57_v23 = vadd.s32 80, %v2063_v63  ;;  %v2199_v25 = vsel %vm2189_vm0, %v559_v17, -1e+30 }
 0x1e5   :  { %vm2202_vm11 = vmor %vm94_vm4, %vm110_vm6  ;;  %v2878_v28 = vmov 0  ;;  %v560_v29 = vsel %vm528_vm8, %v512_v60, %v544_v20  ;;  %v545_v30 = vmul.f32 0.2, %v513_v21  ;;  %v58_v62 = vadd.s32 88, %v2063_v63 }
 0x1e6   :  { %v2879_v28 = vsel %vm2202_vm11, 4294967295, %v2878_v28  ;;  %v514_v31 = vadd.f32 %v2076_v7, %v481_v22  ;;  %vm95_vm14 = vcmp.gt.s32.totalorder %v79_v24, 0  ;;  %vm111_vm15 = vcmp.eq.s32.totalorder %v57_v23, %v2073_v3 }
 0x1e7   :  { %vm529_vm1 = vcmp.gt.f32.partialorder %v513_v21, 0.0  ;;  %v2214_v37 = vsel %vm2202_vm11, %v560_v29, -1e+30  ;;  %vm2217_vm4 = vmor %vm95_vm14, %vm111_vm15  ;;  %v2880_v38 = vmov 0  ;;  %v59_v43 = vadd.s32 96, %v2063_v63  ;;  %v493_v53 = vpop.permute.xlu0 %492 }
 0x1e8   :  { %589 = vmax.xlane.f32.xlu0 %v2133_v41  ;;  %v2881_v38 = vsel %vm2217_vm4, 4294967295, %v2880_v38  ;;  %v561_v39 = vsel %vm529_vm1, %v513_v21, %v545_v30  ;;  %v546_v40 = vmul.f32 0.2, %v514_v31  ;;  %v515_v44 = vadd.f32 %v2076_v7, %v2068_v1 }
 0x1e9   :  { %vm96_vm6 = vcmp.gt.s32.totalorder %v80_v32, 0  ;;  %vm112_vm8 = vcmp.eq.s32.totalorder %v58_v62, %v2073_v3  ;;  %vm530_vm0 = vcmp.gt.f32.partialorder %v514_v31, 0.0  ;;  %v81_v45 = vunpack.c.0.s8 %v68_v33 }
 0x1ea   :  { %v2227_v46 = vsel %vm2217_vm4, %v561_v39, -1e+30  ;;  %vm2230_vm14 = vmor %vm96_vm6, %vm112_vm8  ;;  %v562_v48 = vsel %vm530_vm0, %v514_v31, %v546_v40  ;;  %v547_v51 = vmul.f32 0.2, %v515_v44  ;;  %v82_v52 = vunpack.c.1.s8 %v68_v33 }
 0x1eb   :  { %v2883_v47 = vsel %vm2230_vm14, 4294967295, %v2882_v47  ;;  %v516_v1 = vadd.f32 %v2076_v7, %v489_v36  ;;  %vm97_vm1 = vcmp.gt.s32.totalorder %v81_v45, 0  ;;  %vm113_vm15 = vcmp.eq.s32.totalorder %v59_v43, %v2073_v3  ;;  %v497_v6 = vpop.permute.xlu0 %496 }
 0x1ec   :  { %591 = vmax.xlane.f32.xlu0 %v2146_v49  ;;  %vm531_vm11 = vcmp.gt.f32.partialorder %v515_v44, 0.0  ;;  %v60_v54 = vadd.s32 104, %v2063_v63  ;;  %v2239_v55 = vsel %vm2230_vm14, %v562_v48, -1e+30  ;;  %vm2242_vm6 = vmor %vm97_vm1, %vm113_vm15  ;;  %v2884_v56 = vmov 0 }
 0x1ed   :  { %v2885_v56 = vsel %vm2242_vm6, 4294967295, %v2884_v56  ;;  %v563_v59 = vsel %vm531_vm11, %v515_v44, %v547_v51  ;;  %vm98_vm0 = vcmp.gt.s32.totalorder %v82_v52, 0  ;;  %v548_v61 = vmul.f32 0.2, %v516_v1 }
 0x1ee   :  { %v517_v0 = vadd.f32 %v2076_v7, %v493_v53  ;;  %vm114_vm8 = vcmp.eq.s32.totalorder %v60_v54, %v2073_v3  ;;  %vm532_vm4 = vcmp.gt.f32.partialorder %v516_v1, 0.0  ;;  %v61_v4 = vadd.s32 112, %v2063_v63 }
 0x1ef   :  { %v83_v5 = vunpack.c.2.s8 %v68_v33  ;;  %v2251_v10 = vsel %vm2242_vm6, %v563_v59, -1e+30  ;;  %vm2254_vm1 = vmor %vm98_vm0, %vm114_vm8  ;;  %v2886_v12 = vmov 0  ;;  %v564_v13 = vsel %vm532_vm4, %v516_v1, %v548_v61 }
 0x1f0   :  { %593 = vmax.xlane.f32.xlu0 %v2161_v57  ;;  %v2887_v12 = vsel %vm2254_vm1, 4294967295, %v2886_v12  ;;  %v549_v60 = vmul.f32 0.2, %v517_v0  ;;  %v62_v14 = vadd.s32 120, %v2063_v63  ;;  %v518_v17 = vadd.f32 %v2076_v7, %v497_v6 }
 0x1f1   :  { %vm99_vm11 = vcmp.gt.s32.totalorder %v83_v5, 0  ;;  %vm115_vm15 = vcmp.eq.s32.totalorder %v61_v4, %v2073_v3  ;;  %vm533_vm14 = vcmp.gt.f32.partialorder %v517_v0, 0.0  ;;  %v84_v20 = vunpack.c.3.s8 %v68_v33 }
 0x1f2   :  { %v2263_v21 = vsel %vm2254_vm1, %v564_v13, -1e+30  ;;  %vm2266_vm0 = vmor %vm99_vm11, %vm115_vm15  ;;  %v565_v23 = vsel %vm533_vm14, %v517_v0, %v549_v60  ;;  %v550_v24 = vmul.f32 0.2, %v518_v17  ;;  %vm116_vm8 = vcmp.eq.s32.totalorder %v62_v14, %v2073_v3 }
 0x1f3   :  { %vm100_vm4 = vcmp.gt.s32.totalorder %v84_v20, 0  ;;  %vm534_vm6 = vcmp.gt.f32.partialorder %v518_v17, 0.0  ;;  %v2273_v7 = vsel %vm2266_vm0, %v565_v23, -1e+30  ;;  %vm912_vm14 = vcmask 261120  }
 0x1f4   :  { %595 = vmax.xlane.f32.xlu0 %v2174_v8  ;;  %vm2276_vm1 = vmor %vm100_vm4, %vm116_vm8  ;;  %v566_v30 = vsel %vm534_vm6, %v518_v17, %v550_v24  ;;  %vm2892_vm4 = vnez %v2877_v16  ;;  %vm2893_vm8 = vnez %v2879_v28 }
 0x1f5   :  { %v2282_v62 = vsel %vm2276_vm1, %v566_v30, -1e+30 }
 0x1f8   :  { %597 = vmax.xlane.f32.xlu0 %v2186_v15 }
 0x1fc   :  { %599 = vmax.xlane.f32.xlu0 %v2199_v25 }
 0x200   :  { %601 = vmax.xlane.f32.xlu0 %v2214_v37 }
 0x204   :  { %603 = vmax.xlane.f32.xlu0 %v2227_v46 }
 0x208   :  { %605 = vmax.xlane.f32.xlu0 %v2239_v55 }
 0x20c   :  { %607 = vmax.xlane.f32.xlu0 %v2251_v10 }
 0x210   :  { %609 = vmax.xlane.f32.xlu0 %v2263_v21 }
 0x214   :  { %611 = vmax.xlane.f32.xlu0 %v2273_v7 }
 0x218   :  { %613 = vmax.xlane.f32.xlu0 %v2282_v62 }
 0x265   :  { %v584_v31 = vpop.xlane.xlu0 %583 }
 0x266   :  { %v615_v3 = vsub.f32 %v2092_v18, %v584_v31 }
 0x268   :  { %v631_v32 = vmul.f32 1.442695, %v615_v3 }
 0x269   :  { %v586_v33 = vpop.xlane.xlu0 %585 }
 0x26a   :  { %1624 = vpow2.f32 %v631_v32  ;;  %v616_v36 = vsub.f32 %v2108_v26, %v586_v33 }
 0x26c   :  { %v633_v39 = vmul.f32 1.442695, %v616_v36 }
 0x26d   :  { %v588_v40 = vpop.xlane.xlu0 %587 }
 0x26e   :  { %1626 = vpow2.f32 %v633_v39  ;;  %v617_v43 = vsub.f32 %v2121_v34, %v588_v40 }
 0x270   :  { %v635_v44 = vmul.f32 1.442695, %v617_v43 }
 0x271   :  { %v590_v45 = vpop.xlane.xlu0 %589 }
 0x272   :  { %1628 = vpow2.f32 %v635_v44  ;;  %v618_v48 = vsub.f32 %v2133_v41, %v590_v45 }
 0x274   :  { %v637_v51 = vmul.f32 1.442695, %v618_v48 }
 0x275   :  { %v592_v52 = vpop.xlane.xlu0 %591 }
 0x276   :  { %1630 = vpow2.f32 %v637_v51  ;;  %v619_v18 = vsub.f32 %v2146_v49, %v592_v52 }
 0x277   :  { %v2290_v1 = vpop.eup %1624 }
 0x278   :  { %v639_v53 = vmul.f32 1.442695, %v619_v18  ;;  %663 = vadd.xlane.f32.xlu1 %v2290_v1 }
 0x279   :  { %v594_v26 = vpop.xlane.xlu0 %593 }
 0x27a   :  { %1632 = vpow2.f32 %v639_v53  ;;  %v620_v54 = vsub.f32 %v2161_v57, %v594_v26 }
 0x27b   :  { %v2294_v34 = vpop.eup %1626 }
 0x27c   :  { %v641_v59 = vmul.f32 1.442695, %v620_v54  ;;  %665 = vadd.xlane.f32.xlu0 %v2294_v34 }
 0x27d   :  { %v596_v41 = vpop.xlane.xlu0 %595 }
 0x27e   :  { %1634 = vpow2.f32 %v641_v59  ;;  %v621_v61 = vsub.f32 %v2174_v8, %v596_v41 }
 0x27f   :  { %v2298_v0 = vpop.eup %1628 }
 0x280   :  { %v643_v49 = vmul.f32 1.442695, %v621_v61  ;;  %667 = vadd.xlane.f32.xlu0 %v2298_v0 }
 0x281   :  { %v598_v4 = vpop.xlane.xlu0 %597 }
 0x282   :  { %1636 = vpow2.f32 %v643_v49  ;;  %v622_v5 = vsub.f32 %v2186_v15, %v598_v4 }
 0x283   :  { %v2302_v6 = vpop.eup %1630 }
 0x284   :  { %v645_v57 = vmul.f32 1.442695, %v622_v5  ;;  %669 = vadd.xlane.f32.xlu0 %v2302_v6 }
 0x285   :  { %v600_v13 = vpop.xlane.xlu0 %599 }
 0x286   :  { %1638 = vpow2.f32 %v645_v57  ;;  %v623_v60 = vsub.f32 %v2199_v25, %v600_v13 }
 0x287   :  { %v2306_v14 = vpop.eup %1632 }
 0x288   :  { %v647_v8 = vmul.f32 1.442695, %v623_v60  ;;  %671 = vadd.xlane.f32.xlu0 %v2306_v14 }
 0x289   :  { %v602_v17 = vpop.xlane.xlu0 %601 }
 0x28a   :  { %1640 = vpow2.f32 %v647_v8  ;;  %v624_v20 = vsub.f32 %v2214_v37, %v602_v17 }
 0x28b   :  { %v2310_v23 = vpop.eup %1634 }
 0x28c   :  { %v649_v15 = vmul.f32 1.442695, %v624_v20  ;;  %673 = vadd.xlane.f32.xlu0 %v2310_v23 }
 0x28d   :  { %v604_v24 = vpop.xlane.xlu0 %603 }
 0x28e   :  { %1642 = vpow2.f32 %v649_v15  ;;  %v625_v30 = vsub.f32 %v2227_v46, %v604_v24 }
 0x28f   :  { %v2314_v31 = vpop.eup %1636 }
 0x290   :  { %v651_v25 = vmul.f32 1.442695, %v625_v30  ;;  %675 = vadd.xlane.f32.xlu0 %v2314_v31 }
 0x291   :  { %v606_v3 = vpop.xlane.xlu0 %605 }
 0x292   :  { %1644 = vpow2.f32 %v651_v25  ;;  %v626_v32 = vsub.f32 %v2239_v55, %v606_v3 }
 0x293   :  { %v2318_v33 = vpop.eup %1638 }
 0x294   :  { %v653_v37 = vmul.f32 1.442695, %v626_v32  ;;  %677 = vadd.xlane.f32.xlu0 %v2318_v33 }
 0x295   :  { %v608_v36 = vpop.xlane.xlu0 %607 }
 0x296   :  { %1646 = vpow2.f32 %v653_v37  ;;  %v627_v39 = vsub.f32 %v2251_v10, %v608_v36 }
 0x297   :  { %v2322_v40 = vpop.eup %1640 }
 0x298   :  { %v655_v46 = vmul.f32 1.442695, %v627_v39  ;;  %679 = vadd.xlane.f32.xlu0 %v2322_v40 }
 0x299   :  { %v610_v43 = vpop.xlane.xlu0 %609 }
 0x29a   :  { %1648 = vpow2.f32 %v655_v46  ;;  %v628_v44 = vsub.f32 %v2263_v21, %v610_v43 }
 0x29b   :  { %v2326_v45 = vpop.eup %1642 }
 0x29c   :  { %v657_v55 = vmul.f32 1.442695, %v628_v44  ;;  %681 = vadd.xlane.f32.xlu0 %v2326_v45 }
 0x29d   :  { %v612_v48 = vpop.xlane.xlu0 %611 }
 0x29e   :  { %1650 = vpow2.f32 %v657_v55  ;;  %v629_v51 = vsub.f32 %v2273_v7, %v612_v48 }
 0x29f   :  { %v2330_v52 = vpop.eup %1644 }
 0x2a0   :  { %v659_v10 = vmul.f32 1.442695, %v629_v51  ;;  %683 = vadd.xlane.f32.xlu0 %v2330_v52 }
 0x2a1   :  { %v614_v18 = vpop.xlane.xlu0 %613 }
 0x2a2   :  { %1652 = vpow2.f32 %v659_v10  ;;  %v630_v53 = vsub.f32 %v2282_v62, %v614_v18 }
 0x2a3   :  { %v2334_v26 = vpop.eup %1646 }
 0x2a4   :  { %v661_v21 = vmul.f32 1.442695, %v630_v53  ;;  %685 = vadd.xlane.f32.xlu1 %v2334_v26 }
 0x2a6   :  { %1654 = vpow2.f32 %v661_v21 }
 0x2a7   :  { %v2337_v54 = vpop.eup %1648 }
 0x2a8   :  { %687 = vadd.xlane.f32.xlu0 %v2337_v54 }
 0x2ab   :  { %v2340_v7 = vpop.eup %1650 }
 0x2ac   :  { %689 = vadd.xlane.f32.xlu1 %v2340_v7 }
 0x2af   :  { %v2343_v59 = vpop.eup %1652 }
 0x2b0   :  { %691 = vadd.xlane.f32.xlu0 %v2343_v59 }
 0x2b3   :  { %v2346_v41 = vpop.eup %1654 }
 0x2b4   :  { %693 = vadd.xlane.f32.xlu1 %v2346_v41 }
 0x301   :  { %v664_v62 = vpop.xlane.xlu1 %663 }
 0x302   :  { %1656 = vrcp.f32 %v664_v62 }
 0x305   :  { %v666_v61 = vpop.xlane.xlu0 %665 }
 0x306   :  { %1658 = vrcp.f32 %v666_v61 }
 0x309   :  { %v668_v49 = vpop.xlane.xlu0 %667 }
 0x30a   :  { %1660 = vrcp.f32 %v668_v49 }
 0x30d   :  { %v670_v4 = vpop.xlane.xlu0 %669 }
 0x30e   :  { %1662 = vrcp.f32 %v670_v4 }
 0x30f   :  { %v1657_v5 = vpop.eup %1656 }
 0x310   :  { %v711_v57 = vmul.f32 %v1657_v5, %v2290_v1 }
 0x311   :  { %v672_v13 = vpop.xlane.xlu0 %671 }
 0x312   :  { %1664 = vrcp.f32 %v672_v13  ;;  %1563 = vmatprep.mubr.f32.mxu0 %v711_v57 }
 0x313   :  { %v1659_v60 = vpop.eup %1658 }
 0x314   :  { %v712_v8 = vmul.f32 %v1659_v60, %v2294_v34  ;;  %v1784_v60 = vld [vmem:[%s2850_s2 + $0x20] sm:$0x7]  ;;  %s138_s2 = sld [smem:[#allocation2]] }
 0x315   :  { %v674_v17 = vpop.xlane.xlu0 %673 }
 0x316   :  { %1666 = vrcp.f32 %v674_v17  ;;  %1564 = vmatmul.mubr.f32.vlgmr.msra.gmra.mxu0 %v712_v8  ;;  %v894_v8 = vsub.s32 2, %v2063_v63 }
 0x317   :  { %v1661_v20 = vpop.eup %1660 }
 0x318   :  { %v713_v15 = vmul.f32 %v1661_v20, %v2298_v0  ;;  %v2372_v17 = vrot.slane %v1784_v60, %v894_v8 }
 0x319   :  { %v676_v24 = vpop.xlane.xlu0 %675 }
 0x31a   :  { %1668 = vrcp.f32 %v676_v24  ;;  %1566 = vmatprep.mubr.f32.mxu0 %v713_v15 }
 0x31b   :  { %v1663_v30 = vpop.eup %1662 }
 0x31c   :  { %v714_v25 = vmul.f32 %v1663_v30, %v2302_v6 }
 0x31d   :  { %v678_v3 = vpop.xlane.xlu0 %677 }
 0x31e   :  { %1670 = vrcp.f32 %v678_v3  ;;  %1567 = vmatmul.mubr.f32.gmra.mxu0 %v714_v25 }
 0x31f   :  { %v1665_v1 = vpop.eup %1664 }
 0x320   :  { %v715_v32 = vmul.f32 %v1665_v1, %v2306_v14 }
 0x321   :  { %v680_v37 = vpop.xlane.xlu0 %679 }
 0x322   :  { %1672 = vrcp.f32 %v680_v37  ;;  %1569 = vmatprep.mubr.f32.mxu1 %v715_v32 }
 0x323   :  { %v1667_v34 = vpop.eup %1666 }
 0x324   :  { %v716_v36 = vmul.f32 %v1667_v34, %v2310_v23 }
 0x325   :  { %v682_v39 = vpop.xlane.xlu0 %681 }
 0x326   :  { %1674 = vrcp.f32 %v682_v39  ;;  %1570 = vmatmul.mubr.f32.vlgmr.msra.gmra.mxu1 %v716_v36 }
 0x327   :  { %v1669_v0 = vpop.eup %1668 }
 0x328   :  { %v717_v46 = vmul.f32 %v1669_v0, %v2314_v31 }
 0x329   :  { %v684_v43 = vpop.xlane.xlu0 %683 }
 0x32a   :  { %1676 = vrcp.f32 %v684_v43  ;;  %1572 = vmatprep.mubr.f32.mxu1 %v717_v46 }
 0x32b   :  { %v1671_v6 = vpop.eup %1670 }
 0x32c   :  { %v718_v44 = vmul.f32 %v1671_v6, %v2318_v33 }
 0x32d   :  { %v686_v55 = vpop.xlane.xlu1 %685 }
 0x32e   :  { %1678 = vrcp.f32 %v686_v55  ;;  %1573 = vmatmul.mubr.f32.gmra.mxu1 %v718_v44 }
 0x32f   :  { %v1673_v14 = vpop.eup %1672 }
 0x330   :  { %v719_v48 = vmul.f32 %v1673_v14, %v2322_v40 }
 0x331   :  { %v688_v51 = vpop.xlane.xlu0 %687 }
 0x332   :  { %1680 = vrcp.f32 %v688_v51  ;;  %1575 = vmatprep.mubr.f32.mxu1 %v719_v48 }
 0x333   :  { %v1675_v23 = vpop.eup %1674 }
 0x334   :  { %v720_v10 = vmul.f32 %v1675_v23, %v2326_v45 }
 0x335   :  { %v690_v18 = vpop.xlane.xlu1 %689 }
 0x336   :  { %1682 = vrcp.f32 %v690_v18  ;;  %1576 = vmatmul.mubr.f32.gmra.mxu1 %v720_v10 }
 0x337   :  { %v1677_v31 = vpop.eup %1676 }
 0x338   :  { %v721_v53 = vmul.f32 %v1677_v31, %v2330_v52 }
 0x339   :  { %v692_v21 = vpop.xlane.xlu0 %691 }
 0x33a   :  { %1684 = vrcp.f32 %v692_v21  ;;  %1578 = vmatprep.mubr.f32.mxu1 %v721_v53 }
 0x33b   :  { %v1679_v33 = vpop.eup %1678 }
 0x33c   :  { %v722_v62 = vmul.f32 %v1679_v33, %v2334_v26  ;;  %v729_v26 = vsub.s32 1, %v2063_v63 }
 0x33d   :  { %v694_v61 = vpop.xlane.xlu1 %693 }
 0x33e   :  { %1686 = vrcp.f32 %v694_v61  ;;  %1579 = vmatmul.mubr.f32.gmra.mxu1 %v722_v62 }
 0x33f   :  { %v1681_v40 = vpop.eup %1680 }
 0x340   :  { %v723_v49 = vmul.f32 %v1681_v40, %v2337_v54  ;;  %v2369_v54 = vrot.slane %v1784_v60, %v729_v26 }
 0x342   :  { %1581 = vmatprep.mubr.f32.mxu1 %v723_v49 }
 0x343   :  { %v1683_v45 = vpop.eup %1682 }
 0x344   :  { %v724_v4 = vmul.f32 %v1683_v45, %v2340_v7 }
 0x346   :  { %1582 = vmatmul.mubr.f32.gmra.mxu1 %v724_v4 }
 0x347   :  { %v1685_v5 = vpop.eup %1684 }
 0x348   :  { %v725_v52 = vmul.f32 %v1685_v5, %v2343_v59 }
 0x34a   :  { %1584 = vmatprep.mubr.f32.mxu1 %v725_v52 }
 0x34b   :  { %v1687_v57 = vpop.eup %1686 }
 0x34c   :  { %v726_v13 = vmul.f32 %v1687_v57, %v2346_v41 }
 0x34e   :  { %1585 = vmatmul.mubr.f32.gmra.mxu1 %v726_v13 }
 0x3d6   :  { %v1565_v7 = vpop.f32.mrf.mxu0 }
 0x3d7   :  { %v803_v59 = vadd.f32 %v1565_v7, %v2369_v54 }
 0x3d8   :  { %v797_v20 = vpop.f32.mrf.mxu0 }
 0x3d9   :  { %v877_v15 = vmax.f32 %v803_v59, 0.0  ;;  %v798_v41 = vadd.f32 %v797_v20, %v2369_v54 }
 0x3db   :  { %v876_v24 = vmax.f32 %v798_v41, 0.0  ;;  %v897_v30 = vmul.f32 %v2372_v17, %v877_v15 }
 0x3dd   :  { %v916_v25 = vsel %vm912_vm14, %v897_v30, 0.0  ;;  %v896_v3 = vmul.f32 %v2372_v17, %v876_v24 }
 0x3de   :  { %917 = vadd.xlane.f32.xlu1 %v916_v25  ;;  %v1568_v1 = vpop.f32.mrf.mxu0 }
 0x3df   :  { %v813_v63 = vadd.f32 %v1568_v1, %v2369_v54  ;;  %v913_v32 = vsel %vm912_vm14, %v896_v3, 0.0 }
 0x3e0   :  { %914 = vadd.xlane.f32.xlu0 %v913_v32  ;;  %v807_v36 = vpop.f32.mrf.mxu0 }
 0x3e1   :  { %v879_v37 = vmax.f32 %v813_v63, 0.0  ;;  %v808_v46 = vadd.f32 %v807_v36, %v2369_v54 }
 0x3e3   :  { %v899_v34 = vmul.f32 %v2372_v17, %v879_v37  ;;  %v878_v14 = vmax.f32 %v808_v46, 0.0 }
 0x3e5   :  { %v922_v39 = vsel %vm912_vm14, %v899_v34, 0.0  ;;  %v898_v21 = vmul.f32 %v2372_v17, %v878_v14 }
 0x3e6   :  { %v1571_v0 = vpop.f32.mrf.mxu1  ;;  %923 = vadd.xlane.f32.xlu1 %v922_v39 }
 0x3e7   :  { %v823_v43 = vadd.f32 %v1571_v0, %v2369_v54  ;;  %v919_v49 = vsel %vm912_vm14, %v898_v21, 0.0 }
 0x3e8   :  { %v817_v6 = vpop.f32.mrf.mxu1 }
 0x3e9   :  { %v881_v44 = vmax.f32 %v823_v43, 0.0  ;;  %v818_v55 = vadd.f32 %v817_v6, %v2369_v54 }
 0x3eb   :  { %v880_v48 = vmax.f32 %v818_v55, 0.0  ;;  %v901_v51 = vmul.f32 %v2372_v17, %v881_v44 }
 0x3ed   :  { %v928_v23 = vsel %vm912_vm14, %v901_v51, 0.0  ;;  %v900_v10 = vmul.f32 %v2372_v17, %v880_v48 }
 0x3ee   :  { %v1574_v18 = vpop.f32.mrf.mxu1  ;;  %929 = vadd.xlane.f32.xlu1 %v928_v23 }
 0x3ef   :  { %v833_v31 = vadd.f32 %v1574_v18, %v2369_v54  ;;  %v925_v53 = vsel %vm912_vm14, %v900_v10, 0.0 }
 0x3f0   :  { %v827_v33 = vpop.f32.mrf.mxu1  ;;  %926 = vadd.xlane.f32.xlu0 %v925_v53 }
 0x3f1   :  { %v883_v62 = vmax.f32 %v833_v31, 0.0  ;;  %v828_v61 = vadd.f32 %v827_v33, %v2369_v54 }
 0x3f3   :  { %v882_v40 = vmax.f32 %v828_v61, 0.0  ;;  %v903_v45 = vmul.f32 %v2372_v17, %v883_v62 }
 0x3f4   :  { %920 = vadd.xlane.f32.xlu0 %v919_v49  ;;  %v978_v49 = vstv %s138_s2 }
 0x3f5   :  { %v934_v4 = vsel %vm912_vm14, %v903_v45, 0.0  ;;  %v902_v5 = vmul.f32 %v2372_v17, %v882_v40 }
 0x3f6   :  { %v1577_v52 = vpop.f32.mrf.mxu1  ;;  %935 = vadd.xlane.f32.xlu1 %v934_v4 }
 0x3f7   :  { %v843_v57 = vadd.f32 %v1577_v52, %v2369_v54  ;;  %v931_v13 = vsel %vm912_vm14, %v902_v5, 0.0 }
 0x3f8   :  { %v837_v26 = vpop.f32.mrf.mxu1  ;;  %932 = vadd.xlane.f32.xlu0 %v931_v13 }
 0x3f9   :  { %v885_v60 = vmax.f32 %v843_v57, 0.0  ;;  %v838_v8 = vadd.f32 %v837_v26, %v2369_v54 }
 0x3fb   :  { %v884_v7 = vmax.f32 %v838_v8, 0.0  ;;  %v905_v59 = vmul.f32 %v2372_v17, %v885_v60 }
 0x3fd   :  { %v904_v20 = vmul.f32 %v2372_v17, %v884_v7  ;;  %v940_v15 = vsel %vm912_vm14, %v905_v59, 0.0 }
 0x3fe   :  { %v1580_v41 = vpop.f32.mrf.mxu1  ;;  %941 = vadd.xlane.f32.xlu1 %v940_v15 }
 0x3ff   :  { %v853_v24 = vadd.f32 %v1580_v41, %v2369_v54  ;;  %v937_v30 = vsel %vm912_vm14, %v904_v20, 0.0 }
 0x400   :  { %v847_v25 = vpop.f32.mrf.mxu1  ;;  %938 = vadd.xlane.f32.xlu0 %v937_v30 }
 0x401   :  { %v887_v3 = vmax.f32 %v853_v24, 0.0  ;;  %v848_v1 = vadd.f32 %v847_v25, %v2369_v54 }
 0x403   :  { %v886_v63 = vmax.f32 %v848_v1, 0.0  ;;  %v907_v32 = vmul.f32 %v2372_v17, %v887_v3 }
 0x405   :  { %v906_v37 = vmul.f32 %v2372_v17, %v886_v63  ;;  %v946_v34 = vsel %vm912_vm14, %v907_v32, 0.0 }
 0x406   :  { %v1583_v36 = vpop.f32.mrf.mxu1  ;;  %947 = vadd.xlane.f32.xlu1 %v946_v34 }
 0x407   :  { %v863_v39 = vadd.f32 %v1583_v36, %v2369_v54  ;;  %v943_v0 = vsel %vm912_vm14, %v906_v37, 0.0 }
 0x408   :  { %v857_v46 = vpop.f32.mrf.mxu1  ;;  %944 = vadd.xlane.f32.xlu0 %v943_v0 }
 0x409   :  { %v889_v43 = vmax.f32 %v863_v39, 0.0  ;;  %v858_v6 = vadd.f32 %v857_v46, %v2369_v54 }
 0x40b   :  { %v888_v44 = vmax.f32 %v858_v6, 0.0  ;;  %v909_v55 = vmul.f32 %v2372_v17, %v889_v43 }
 0x40d   :  { %v908_v14 = vmul.f32 %v2372_v17, %v888_v44  ;;  %v952_v48 = vsel %vm912_vm14, %v909_v55, 0.0  ;;  %v2470_v55 = vstv %s1425_s18 }
 0x40e   :  { %v1586_v51 = vpop.f32.mrf.mxu1  ;;  %953 = vadd.xlane.f32.xlu1 %v952_v48 }
 0x40f   :  { %v873_v23 = vadd.f32 %v1586_v51, %v2369_v54  ;;  %v949_v10 = vsel %vm912_vm14, %v908_v14, 0.0 }
 0x410   :  { %v867_v18 = vpop.f32.mrf.mxu1  ;;  %950 = vadd.xlane.f32.xlu0 %v949_v10 }
 0x411   :  { %v891_v31 = vmax.f32 %v873_v23, 0.0  ;;  %v868_v53 = vadd.f32 %v867_v18, %v2369_v54 }
 0x413   :  { %v890_v21 = vmax.f32 %v868_v53, 0.0  ;;  %v911_v33 = vmul.f32 %v2372_v17, %v891_v31 }
 0x415   :  { %v910_v62 = vmul.f32 %v2372_v17, %v890_v21  ;;  %v958_v61 = vsel %vm912_vm14, %v911_v33, 0.0 }
 0x416   :  { %959 = vadd.xlane.f32.xlu1 %v958_v61 }
 0x417   :  { %v955_v40 = vsel %vm912_vm14, %v910_v62, 0.0 }
 0x418   :  { %956 = vadd.xlane.f32.xlu0 %v955_v40 }
 0x467   :  { %v2425_v5 = vpop.xlane.xlu1 %917 }
 0x468   :  { %v980_v54 = vmul.f32 %v978_v49, %v2425_v5  ;;  %v963_v48 = vmul.f32 %v2470_v55, %v2425_v5 }
 0x469   :  { %v2422_v45 = vpop.xlane.xlu0 %914 }
 0x46a   :  { %v979_v4 = vmul.f32 %v978_v49, %v2422_v45  ;;  %v962_v51 = vmul.f32 %v2470_v55, %v2422_v45 }
 0x46c   :  { %995 = vxpose.xlu0.b32.start [1/16] (narrow) %v979_v4, 8 }
 0x46f   :  { %v2433_v13 = vpop.xlane.xlu1 %923 }
 0x470   :  { %996 = vxpose.xlu0.b32.cont [2/16] (narrow) %v980_v54, 8  ;;  %v982_v26 = vmul.f32 %v978_v49, %v2433_v13  ;;  %v965_v62 = vmul.f32 %v2470_v55, %v2433_v13 }
 0x477   :  { %v2437_v8 = vpop.xlane.xlu1 %929 }
 0x478   :  { %v984_v7 = vmul.f32 %v978_v49, %v2437_v8 }
 0x479   :  { %v2428_v52 = vpop.xlane.xlu0 %926 }
 0x47a   :  { %v983_v60 = vmul.f32 %v978_v49, %v2428_v52 }
 0x47d   :  { %v2430_v17 = vpop.xlane.xlu0 %920 }
 0x47e   :  { %v981_v57 = vmul.f32 %v978_v49, %v2430_v17  ;;  %v964_v10 = vmul.f32 %v2470_v55, %v2430_v17 }
 0x47f   :  { %v2443_v15 = vpop.xlane.xlu1 %935 }
 0x480   :  { %997 = vxpose.xlu0.b32.cont [3/16] (narrow) %v981_v57, 8  ;;  %v986_v41 = vmul.f32 %v978_v49, %v2443_v15  ;;  %v966_v57 = vmul.f32 %v2470_v55, %v2428_v52 }
 0x481   :  { %v2440_v59 = vpop.xlane.xlu0 %932 }
 0x482   :  { %v985_v20 = vmul.f32 %v978_v49, %v2440_v59 }
 0x484   :  { %998 = vxpose.xlu0.b32.cont [4/16] (narrow) %v982_v26, 8 }
 0x487   :  { %v2449_v25 = vpop.xlane.xlu1 %941 }
 0x488   :  { %999 = vxpose.xlu0.b32.cont [5/16] (narrow) %v983_v60, 8  ;;  %v988_v3 = vmul.f32 %v978_v49, %v2449_v25 }
 0x489   :  { %v2446_v24 = vpop.xlane.xlu0 %938 }
 0x48a   :  { %v987_v30 = vmul.f32 %v978_v49, %v2446_v24 }
 0x48c   :  { %1000 = vxpose.xlu0.b32.cont [6/16] (narrow) %v984_v7, 8 }
 0x48f   :  { %v2455_v32 = vpop.xlane.xlu1 %947 }
 0x490   :  { %1001 = vxpose.xlu0.b32.cont [7/16] (narrow) %v985_v20, 8  ;;  %v990_v37 = vmul.f32 %v978_v49, %v2455_v32  ;;  %v967_v20 = vmul.f32 %v2470_v55, %v2437_v8 }
 0x491   :  { %v2452_v1 = vpop.xlane.xlu0 %944 }
 0x492   :  { %v989_v63 = vmul.f32 %v978_v49, %v2452_v1 }
 0x494   :  { %1002 = vxpose.xlu0.b32.cont [8/16] (narrow) %v986_v41, 8 }
 0x497   :  { %v2461_v39 = vpop.xlane.xlu1 %953 }
 0x498   :  { %1003 = vxpose.xlu0.b32.cont [9/16] (narrow) %v987_v30, 8  ;;  %v992_v0 = vmul.f32 %v978_v49, %v2461_v39 }
 0x499   :  { %v2458_v34 = vpop.xlane.xlu0 %950 }
 0x49a   :  { %v991_v36 = vmul.f32 %v978_v49, %v2458_v34 }
 0x49c   :  { %1004 = vxpose.xlu0.b32.cont [10/16] (narrow) %v988_v3, 8 }
 0x49f   :  { %v2467_v6 = vpop.xlane.xlu1 %959 }
 0x4a0   :  { %1005 = vxpose.xlu0.b32.cont [11/16] (narrow) %v989_v63, 8  ;;  %v994_v44 = vmul.f32 %v978_v49, %v2467_v6  ;;  %v968_v63 = vmul.f32 %v2470_v55, %v2440_v59 }
 0x4a1   :  { %v2464_v46 = vpop.xlane.xlu0 %956 }
 0x4a2   :  { %v993_v43 = vmul.f32 %v978_v49, %v2464_v46 }
 0x4a4   :  { %1006 = vxpose.xlu0.b32.cont [12/16] (narrow) %v990_v37, 8 }
 0x4a8   :  { %1007 = vxpose.xlu0.b32.cont [13/16] (narrow) %v991_v36, 8 }
 0x4ac   :  { %1008 = vxpose.xlu0.b32.cont [14/16] (narrow) %v992_v0, 8 }
 0x4b0   :  { %1009 = vxpose.xlu0.b32.cont [15/16] (narrow) %v993_v43, 8  ;;  %v969_v43 = vmul.f32 %v2470_v55, %v2443_v15 }
 0x4b4   :  { %1010 = vxpose.xlu0.b32.end [16/16] (narrow) %v994_v44, 8 }
 0x4f4   :  { %v1011_v14 = vpop.trf.xlu0 }
 0x4f5   :  { %v2477_v23 = vrot.slane %v1011_v14, %v2071_v2 }
 0x4f7   :  { %v1031_v18 = vadd.f32 %v2477_v23, %v962_v51  ;;  %v1032_v31 = vadd.f32 %v2477_v23, %v963_v48  ;;  %v1033_v33 = vadd.f32 %v2477_v23, %v964_v10  ;;  %v1034_v54 = vadd.f32 %v2477_v23, %v965_v62 }
 0x4f8   :  { %v1035_v7 = vadd.f32 %v2477_v23, %v966_v57  ;;  %v1036_v3 = vadd.f32 %v2477_v23, %v967_v20  ;;  %v1037_v0 = vadd.f32 %v2477_v23, %v968_v63  ;;  %v1038_v48 = vadd.f32 %v2477_v23, %v969_v43 }
 0x4f9   :  { %vm1047_vm6 = vcmp.gt.f32.partialorder %v1031_v18, 0.0  ;;  %v1063_v53 = vmul.f32 0.2, %v1031_v18  ;;  %v1064_v21 = vmul.f32 0.2, %v1032_v31  ;;  %vm1048_vm11 = vcmp.gt.f32.partialorder %v1032_v31, 0.0 }
 0x4fa   :  { %v1065_v4 = vmul.f32 0.2, %v1033_v33  ;;  %vm1049_vm15 = vcmp.gt.f32.partialorder %v1033_v33, 0.0  ;;  %v1066_v11 = vmul.f32 0.2, %v1034_v54  ;;  %v970_v51 = vmul.f32 %v2470_v55, %v2446_v24 }
 0x4fb   :  { %v1079_v61 = vsel %vm1047_vm6, %v1031_v18, %v1063_v53  ;;  %v1080_v49 = vsel %vm1048_vm11, %v1032_v31, %v1064_v21  ;;  %v1067_v19 = vmul.f32 0.2, %v1035_v7  ;;  %v1068_v27 = vmul.f32 0.2, %v1036_v3 }
 0x4fc   :  { %v2488_v40 = vsel %vm2083_vm5, %v1079_v61, -1e+30  ;;  %v2496_v26 = vsel %vm2095_vm9, %v1080_v49, -1e+30  ;;  %v1081_v60 = vsel %vm1049_vm15, %v1033_v33, %v1065_v4  ;;  %vm1050_vm5 = vcmp.gt.f32.partialorder %v1034_v54, 0.0 }
 0x4fd   :  { %1111 = vmax.xlane.f32.xlu1 %v2488_v40  ;;  %v2504_v41 = vsel %vm2111_vm13, %v1081_v60, -1e+30  ;;  %v1082_v30 = vsel %vm1050_vm5, %v1034_v54, %v1066_v11  ;;  %vm1051_vm9 = vcmp.gt.f32.partialorder %v1035_v7, 0.0  ;;  %vm1052_vm13 = vcmp.gt.f32.partialorder %v1036_v3, 0.0 }
 0x4fe   :  { %v2512_v37 = vsel %vm2124_vm2, %v1082_v30, -1e+30  ;;  %v1083_v36 = vsel %vm1051_vm9, %v1035_v7, %v1067_v19  ;;  %v1084_v14 = vsel %vm1052_vm13, %v1036_v3, %v1068_v27  ;;  %v1069_v35 = vmul.f32 0.2, %v1037_v0 }
 0x4ff   :  { %v2520_v44 = vsel %vm2136_vm7, %v1083_v36, -1e+30  ;;  %vm1053_vm2 = vcmp.gt.f32.partialorder %v1037_v0, 0.0  ;;  %v2528_v10 = vsel %vm2149_vm12, %v1084_v14, -1e+30  ;;  %v1039_v31 = vadd.f32 %v2477_v23, %v970_v51 }
 0x500   :  { %v1085_v18 = vsel %vm1053_vm2, %v1037_v0, %v1069_v35  ;;  %v1070_v42 = vmul.f32 0.2, %v1038_v48  ;;  %vm1054_vm7 = vcmp.gt.f32.partialorder %v1038_v48, 0.0  ;;  %v971_v53 = vmul.f32 %v2470_v55, %v2449_v25 }
 0x501   :  { %1113 = vmax.xlane.f32.xlu1 %v2496_v26  ;;  %v2536_v21 = vsel %vm2164_vm3, %v1085_v18, -1e+30  ;;  %v1071_v50 = vmul.f32 0.2, %v1039_v31  ;;  %vm1055_vm12 = vcmp.gt.f32.partialorder %v1039_v31, 0.0  ;;  %v972_v61 = vmul.f32 %v2470_v55, %v2452_v1 }
 0x502   :  { %v1086_v33 = vsel %vm1054_vm7, %v1038_v48, %v1070_v42  ;;  %v1040_v62 = vadd.f32 %v2477_v23, %v971_v53  ;;  %v973_v57 = vmul.f32 %v2470_v55, %v2455_v32  ;;  %v974_v20 = vmul.f32 %v2470_v55, %v2458_v34 }
 0x503   :  { %v2544_v49 = vsel %vm2177_vm10, %v1086_v33, -1e+30  ;;  %v1087_v4 = vsel %vm1055_vm12, %v1039_v31, %v1071_v50  ;;  %v1041_v54 = vadd.f32 %v2477_v23, %v972_v61  ;;  %v975_v63 = vmul.f32 %v2470_v55, %v2461_v39 }
 0x504   :  { %v1072_v58 = vmul.f32 0.2, %v1040_v62  ;;  %vm1056_vm3 = vcmp.gt.f32.partialorder %v1040_v62, 0.0  ;;  %v2552_v60 = vsel %vm2892_vm4, %v1087_v4, -1e+30  ;;  %v1042_v7 = vadd.f32 %v2477_v23, %v973_v57 }
 0x505   :  { %1115 = vmax.xlane.f32.xlu1 %v2504_v41  ;;  %v1073_v9 = vmul.f32 0.2, %v1041_v54  ;;  %vm1057_vm10 = vcmp.gt.f32.partialorder %v1041_v54, 0.0  ;;  %v1043_v3 = vadd.f32 %v2477_v23, %v974_v20  ;;  %vm2894_vm6 = vnez %v2881_v38 }
 0x506   :  { %v1088_v11 = vsel %vm1056_vm3, %v1040_v62, %v1072_v58  ;;  %v1074_v16 = vmul.f32 0.2, %v1042_v7  ;;  %vm1058_vm14 = vcmp.gt.f32.partialorder %v1042_v7, 0.0  ;;  %v1044_v0 = vadd.f32 %v2477_v23, %v975_v63 }
 0x507   :  { %v2560_v30 = vsel %vm2893_vm8, %v1088_v11, -1e+30  ;;  %v1089_v19 = vsel %vm1057_vm10, %v1041_v54, %v1073_v9  ;;  %v1075_v28 = vmul.f32 0.2, %v1043_v3  ;;  %vm1059_vm11 = vcmp.gt.f32.partialorder %v1043_v3, 0.0 }
 0x508   :  { %v2568_v36 = vsel %vm2894_vm6, %v1089_v19, -1e+30  ;;  %v1090_v27 = vsel %vm1058_vm14, %v1042_v7, %v1074_v16  ;;  %v976_v43 = vmul.f32 %v2470_v55, %v2464_v46  ;;  %vm2895_vm15 = vnez %v2883_v47 }
 0x509   :  { %1117 = vmax.xlane.f32.xlu1 %v2512_v37  ;;  %v2576_v14 = vsel %vm2895_vm15, %v1090_v27, -1e+30  ;;  %v1091_v35 = vsel %vm1059_vm11, %v1043_v3, %v1075_v28  ;;  %v1076_v38 = vmul.f32 0.2, %v1044_v0  ;;  %vm1060_vm5 = vcmp.gt.f32.partialorder %v1044_v0, 0.0 }
 0x50a   :  { %v1045_v48 = vadd.f32 %v2477_v23, %v976_v43  ;;  %v977_v51 = vmul.f32 %v2470_v55, %v2467_v6  ;;  %vm2896_vm9 = vnez %v2885_v56  ;;  %vm2897_vm2 = vnez %v2887_v12 }
 0x50b   :  { %v2584_v18 = vsel %vm2896_vm9, %v1091_v35, -1e+30  ;;  %v1092_v42 = vsel %vm1060_vm5, %v1044_v0, %v1076_v38 }
 0x50c   :  { %v1077_v47 = vmul.f32 0.2, %v1045_v48  ;;  %v1046_v31 = vadd.f32 %v2477_v23, %v977_v51  ;;  %vm1061_vm13 = vcmp.gt.f32.partialorder %v1045_v48, 0.0  ;;  %v2590_v53 = vsel %vm2897_vm2, %v1092_v42, -1e+30 }
 0x50d   :  { %1119 = vmax.xlane.f32.xlu1 %v2520_v44 }
 0x50e   :  { %v1093_v33 = vsel %vm1061_vm13, %v1045_v48, %v1077_v47  ;;  %v1078_v50 = vmul.f32 0.2, %v1046_v31  ;;  %vm1062_vm7 = vcmp.gt.f32.partialorder %v1046_v31, 0.0 }
 0x50f   :  { %v2595_v56 = vsel %vm2266_vm0, %v1093_v33, -1e+30 }
 0x510   :  { %v1094_v55 = vsel %vm1062_vm7, %v1046_v31, %v1078_v50 }
 0x511   :  { %1121 = vmax.xlane.f32.xlu1 %v2528_v10  ;;  %v2600_v23 = vsel %vm2276_vm1, %v1094_v55, -1e+30  ;;  %vm2898_vm1 = vcmask 269312  }
 0x512   :  { %vm2899_vm0 = vmmov %vm2898_vm1 }
 0x513   :  { %vm2900_vm12 = vmmov %vm2899_vm0 }
 0x514   :  { %vm2901_vm3 = vmmov %vm2899_vm0 }
 0x515   :  { %1123 = vmax.xlane.f32.xlu1 %v2536_v21  ;;  %vm2902_vm4 = vmmov %vm2899_vm0 }
 0x516   :  { %vm2903_vm10 = vmmov %vm2899_vm0 }
 0x517   :  { %vm2904_vm8 = vmmov %vm2899_vm0 }
 0x518   :  { %vm2905_vm14 = vmmov %vm2899_vm0 }
 0x519   :  { %1125 = vmax.xlane.f32.xlu1 %v2544_v49  ;;  %vm2906_vm6 = vmmov %vm2899_vm0 }
 0x51a   :  { %vm2907_vm11 = vmmov %vm2899_vm0 }
 0x51b   :  { %vm2908_vm15 = vmmov %vm2899_vm0 }
 0x51c   :  { %vm2909_vm5 = vmmov %vm2899_vm0 }
 0x51d   :  { %1127 = vmax.xlane.f32.xlu1 %v2552_v60  ;;  %vm2910_vm9 = vmmov %vm2899_vm0 }
 0x51e   :  { %vm2911_vm13 = vmmov %vm2899_vm0 }
 0x51f   :  { %vm2912_vm2 = vmmov %vm2899_vm0 }
 0x520   :  { %vm2913_vm7 = vmmov %vm2899_vm0 }
 0x521   :  { %1129 = vmax.xlane.f32.xlu1 %v2560_v30 }
 0x525   :  { %1131 = vmax.xlane.f32.xlu1 %v2568_v36 }
 0x529   :  { %1133 = vmax.xlane.f32.xlu1 %v2576_v14 }
 0x52d   :  { %1135 = vmax.xlane.f32.xlu1 %v2584_v18 }
 0x531   :  { %1137 = vmax.xlane.f32.xlu1 %v2590_v53 }
 0x535   :  { %1139 = vmax.xlane.f32.xlu1 %v2595_v56 }
 0x539   :  { %1141 = vmax.xlane.f32.xlu1 %v2600_v23 }
 0x586   :  { %v1112_v12 = vpop.xlane.xlu1 %1111 }
 0x587   :  { %v1143_v62 = vsub.f32 %v2488_v40, %v1112_v12 }
 0x589   :  { %v1159_v61 = vmul.f32 1.442695, %v1143_v62 }
 0x58a   :  { %v1114_v4 = vpop.xlane.xlu1 %1113 }
 0x58b   :  { %1688 = vpow2.f32 %v1159_v61  ;;  %v1144_v58 = vsub.f32 %v2496_v26, %v1114_v4 }
 0x58d   :  { %v1161_v22 = vmul.f32 1.442695, %v1144_v58 }
 0x58e   :  { %v1116_v54 = vpop.xlane.xlu1 %1115 }
 0x58f   :  { %1690 = vpow2.f32 %v1161_v22  ;;  %v1145_v57 = vsub.f32 %v2504_v41, %v1116_v54 }
 0x591   :  { %v1163_v11 = vmul.f32 1.442695, %v1145_v57 }
 0x592   :  { %v1118_v9 = vpop.xlane.xlu1 %1117 }
 0x593   :  { %1692 = vpow2.f32 %v1163_v11  ;;  %v1146_v29 = vsub.f32 %v2512_v37, %v1118_v9 }
 0x595   :  { %v1165_v7 = vmul.f32 1.442695, %v1146_v29 }
 0x596   :  { %v1120_v20 = vpop.xlane.xlu1 %1119 }
 0x597   :  { %1694 = vpow2.f32 %v1165_v7  ;;  %v1147_v40 = vsub.f32 %v2520_v44, %v1120_v20 }
 0x598   :  { %v2608_v19 = vpop.eup %1688 }
 0x599   :  { %v1167_v16 = vmul.f32 1.442695, %v1147_v40  ;;  %1191 = vadd.xlane.f32.xlu1 %v2608_v19 }
 0x59a   :  { %v1122_v26 = vpop.xlane.xlu1 %1121 }
 0x59b   :  { %1696 = vpow2.f32 %v1167_v16  ;;  %v1148_v3 = vsub.f32 %v2528_v10, %v1122_v26 }
 0x59c   :  { %v2612_v41 = vpop.eup %1690 }
 0x59d   :  { %v1169_v63 = vmul.f32 1.442695, %v1148_v3  ;;  %1193 = vadd.xlane.f32.xlu1 %v2612_v41 }
 0x59e   :  { %v1124_v37 = vpop.xlane.xlu1 %1123 }
 0x59f   :  { %1698 = vpow2.f32 %v1169_v63  ;;  %v1149_v27 = vsub.f32 %v2536_v21, %v1124_v37 }
 0x5a0   :  { %v2616_v28 = vpop.eup %1692 }
 0x5a1   :  { %v1171_v44 = vmul.f32 1.442695, %v1149_v27  ;;  %1195 = vadd.xlane.f32.xlu1 %v2616_v28 }
 0x5a2   :  { %v1126_v0 = vpop.xlane.xlu1 %1125 }
 0x5a3   :  { %1700 = vpow2.f32 %v1171_v44  ;;  %v1150_v43 = vsub.f32 %v2544_v49, %v1126_v0 }
 0x5a4   :  { %v2620_v35 = vpop.eup %1694 }
 0x5a5   :  { %v1173_v10 = vmul.f32 1.442695, %v1150_v43  ;;  %1197 = vadd.xlane.f32.xlu1 %v2620_v35 }
 0x5a6   :  { %v1128_v38 = vpop.xlane.xlu1 %1127 }
 0x5a7   :  { %1702 = vpow2.f32 %v1173_v10  ;;  %v1151_v48 = vsub.f32 %v2552_v60, %v1128_v38 }
 0x5a8   :  { %v2624_v51 = vpop.eup %1696 }
 0x5a9   :  { %v1175_v21 = vmul.f32 1.442695, %v1151_v48  ;;  %1199 = vadd.xlane.f32.xlu1 %v2624_v51 }
 0x5aa   :  { %v1130_v42 = vpop.xlane.xlu1 %1129 }
 0x5ab   :  { %1704 = vpow2.f32 %v1175_v21  ;;  %v1152_v47 = vsub.f32 %v2560_v30, %v1130_v42 }
 0x5ac   :  { %v2628_v31 = vpop.eup %1698 }
 0x5ad   :  { %v1177_v49 = vmul.f32 1.442695, %v1152_v47  ;;  %1201 = vadd.xlane.f32.xlu1 %v2628_v31 }
 0x5ae   :  { %v1132_v33 = vpop.xlane.xlu1 %1131 }
 0x5af   :  { %1706 = vpow2.f32 %v1177_v49  ;;  %v1153_v50 = vsub.f32 %v2568_v36, %v1132_v33 }
 0x5b0   :  { %v2632_v55 = vpop.eup %1700 }
 0x5b1   :  { %v1179_v60 = vmul.f32 1.442695, %v1153_v50  ;;  %1203 = vadd.xlane.f32.xlu1 %v2632_v55 }
 0x5b2   :  { %v1134_v12 = vpop.xlane.xlu1 %1133 }
 0x5b3   :  { %1708 = vpow2.f32 %v1179_v60  ;;  %v1154_v62 = vsub.f32 %v2576_v14, %v1134_v12 }
 0x5b4   :  { %v2636_v61 = vpop.eup %1702 }
 0x5b5   :  { %v1181_v30 = vmul.f32 1.442695, %v1154_v62  ;;  %1205 = vadd.xlane.f32.xlu1 %v2636_v61 }
 0x5b6   :  { %v1136_v4 = vpop.xlane.xlu1 %1135 }
 0x5b7   :  { %1710 = vpow2.f32 %v1181_v30  ;;  %v1155_v58 = vsub.f32 %v2584_v18, %v1136_v4 }
 0x5b8   :  { %v2640_v22 = vpop.eup %1704 }
 0x5b9   :  { %v1183_v36 = vmul.f32 1.442695, %v1155_v58  ;;  %1207 = vadd.xlane.f32.xlu1 %v2640_v22 }
 0x5ba   :  { %v1138_v54 = vpop.xlane.xlu1 %1137 }
 0x5bb   :  { %1712 = vpow2.f32 %v1183_v36  ;;  %v1156_v57 = vsub.f32 %v2590_v53, %v1138_v54 }
 0x5bc   :  { %v2644_v11 = vpop.eup %1706 }
 0x5bd   :  { %v1185_v14 = vmul.f32 1.442695, %v1156_v57  ;;  %1209 = vadd.xlane.f32.xlu1 %v2644_v11 }
 0x5be   :  { %v1140_v9 = vpop.xlane.xlu1 %1139 }
 0x5bf   :  { %1714 = vpow2.f32 %v1185_v14  ;;  %v1157_v29 = vsub.f32 %v2595_v56, %v1140_v9 }
 0x5c0   :  { %v2648_v7 = vpop.eup %1708 }
 0x5c1   :  { %v1187_v18 = vmul.f32 1.442695, %v1157_v29  ;;  %1211 = vadd.xlane.f32.xlu0 %v2648_v7 }
 0x5c2   :  { %v1142_v20 = vpop.xlane.xlu1 %1141 }
 0x5c3   :  { %1716 = vpow2.f32 %v1187_v18  ;;  %v1158_v40 = vsub.f32 %v2600_v23, %v1142_v20 }
 0x5c4   :  { %v2652_v16 = vpop.eup %1710 }
 0x5c5   :  { %v1189_v53 = vmul.f32 1.442695, %v1158_v40  ;;  %1213 = vadd.xlane.f32.xlu1 %v2652_v16 }
 0x5c7   :  { %1718 = vpow2.f32 %v1189_v53 }
 0x5c8   :  { %v2655_v26 = vpop.eup %1712 }
 0x5c9   :  { %1215 = vadd.xlane.f32.xlu1 %v2655_v26 }
 0x5cc   :  { %v2658_v56 = vpop.eup %1714 }
 0x5cd   :  { %1217 = vadd.xlane.f32.xlu1 %v2658_v56 }
 0x5d0   :  { %v2661_v3 = vpop.eup %1716 }
 0x5d1   :  { %1219 = vadd.xlane.f32.xlu1 %v2661_v3 }
 0x5d4   :  { %v2664_v63 = vpop.eup %1718 }
 0x5d5   :  { %1221 = vadd.xlane.f32.xlu1 %v2664_v63 }
 0x608   :  { %1255 = vxpose.xlu1.b32.start [1/16] (narrow) %v2422_v45, 8 }
 0x60c   :  { %1256 = vxpose.xlu1.b32.cont [2/16] (narrow) %v2425_v5, 8 }
 0x610   :  { %1257 = vxpose.xlu1.b32.cont [3/16] (narrow) %v2430_v17, 8 }
 0x614   :  { %1258 = vxpose.xlu1.b32.cont [4/16] (narrow) %v2433_v13, 8 }
 0x618   :  { %1259 = vxpose.xlu1.b32.cont [5/16] (narrow) %v2428_v52, 8 }
 0x61c   :  { %1260 = vxpose.xlu1.b32.cont [6/16] (narrow) %v2437_v8, 8 }
 0x620   :  { %1261 = vxpose.xlu1.b32.cont [7/16] (narrow) %v2440_v59, 8 }
 0x622   :  { %v1192_v23 = vpop.xlane.xlu1 %1191 }
 0x623   :  { %1720 = vrcp.f32 %v1192_v23 }
 0x624   :  { %1262 = vxpose.xlu1.b32.cont [8/16] (narrow) %v2443_v15, 8 }
 0x626   :  { %v1194_v45 = vpop.xlane.xlu1 %1193 }
 0x627   :  { %1722 = vrcp.f32 %v1194_v45 }
 0x628   :  { %1263 = vxpose.xlu1.b32.cont [9/16] (narrow) %v2446_v24, 8 }
 0x62a   :  { %v1196_v5 = vpop.xlane.xlu1 %1195 }
 0x62b   :  { %1724 = vrcp.f32 %v1196_v5 }
 0x62c   :  { %1264 = vxpose.xlu1.b32.cont [10/16] (narrow) %v2449_v25, 8 }
 0x62e   :  { %v1198_v52 = vpop.xlane.xlu1 %1197 }
 0x62f   :  { %1726 = vrcp.f32 %v1198_v52 }
 0x630   :  { %1265 = vxpose.xlu1.b32.cont [11/16] (narrow) %v2452_v1, 8 }
 0x632   :  { %v1200_v17 = vpop.xlane.xlu1 %1199 }
 0x633   :  { %1728 = vrcp.f32 %v1200_v17 }
 0x634   :  { %1266 = vxpose.xlu1.b32.cont [12/16] (narrow) %v2455_v32, 8 }
 0x636   :  { %v1202_v13 = vpop.xlane.xlu1 %1201 }
 0x637   :  { %1730 = vrcp.f32 %v1202_v13  ;;  %v2718_v13 = vstv %s1426_s19 }
 0x638   :  { %1267 = vxpose.xlu1.b32.cont [13/16] (narrow) %v2458_v34, 8 }
 0x63a   :  { %v1204_v8 = vpop.xlane.xlu1 %1203 }
 0x63b   :  { %1732 = vrcp.f32 %v1204_v8 }
 0x63c   :  { %1268 = vxpose.xlu1.b32.cont [14/16] (narrow) %v2461_v39, 8  ;;  %v1721_v39 = vpop.eup %1720 }
 0x63d   :  { %v1723_v44 = vpop.eup %1722 }
 0x63e   :  { %v1206_v59 = vpop.xlane.xlu1 %1205  ;;  %v1240_v43 = vmul.f32 %v1723_v44, %v2612_v41  ;;  %v1725_v10 = vpop.eup %1724 }
 0x63f   :  { %v1241_v48 = vmul.f32 %v1725_v10, %v2616_v28  ;;  %v1727_v21 = vpop.eup %1726  ;;  %1734 = vrcp.f32 %v1206_v59 }
 0x640   :  { %1269 = vxpose.xlu1.b32.cont [15/16] (narrow) %v2464_v46, 8  ;;  %v1729_v42 = vpop.eup %1728 }
 0x641   :  { %v1243_v41 = vmul.f32 %v1729_v42, %v2624_v51 }
 0x642   :  { %v1208_v15 = vpop.xlane.xlu1 %1207 }
 0x643   :  { %1736 = vrcp.f32 %v1208_v15 }
 0x644   :  { %1270 = vxpose.xlu1.b32.end [16/16] (narrow) %v2467_v6, 8  ;;  %v1239_v6 = vmul.f32 %v1721_v39, %v2608_v19  ;;  %v1242_v19 = vmul.f32 %v1727_v21, %v2620_v35  ;;  %v1731_v49 = vpop.eup %1730 }
 0x645   :  { %v1244_v28 = vmul.f32 %v1731_v49, %v2628_v31 }
 0x646   :  { %v1210_v24 = vpop.xlane.xlu1 %1209 }
 0x647   :  { %1738 = vrcp.f32 %v1210_v24 }
 0x648   :  { %v1733_v50 = vpop.eup %1732 }
 0x649   :  { %v1245_v35 = vmul.f32 %v1733_v50, %v2632_v55 }
 0x64a   :  { %v1212_v60 = vpop.xlane.xlu0 %1211 }
 0x64b   :  { %1740 = vrcp.f32 %v1212_v60 }
 0x64c   :  { %v1735_v62 = vpop.eup %1734 }
 0x64d   :  { %v1246_v51 = vmul.f32 %v1735_v62, %v2636_v61 }
 0x64e   :  { %v1214_v25 = vpop.xlane.xlu1 %1213 }
 0x64f   :  { %1742 = vrcp.f32 %v1214_v25 }
 0x650   :  { %v1737_v4 = vpop.eup %1736 }
 0x651   :  { %v1247_v31 = vmul.f32 %v1737_v4, %v2640_v22 }
 0x652   :  { %v1216_v1 = vpop.xlane.xlu1 %1215 }
 0x653   :  { %1744 = vrcp.f32 %v1216_v1 }
 0x654   :  { %v1739_v36 = vpop.eup %1738 }
 0x655   :  { %v1248_v55 = vmul.f32 %v1739_v36, %v2644_v11 }
 0x656   :  { %v1218_v37 = vpop.xlane.xlu1 %1217 }
 0x657   :  { %1746 = vrcp.f32 %v1218_v37 }
 0x658   :  { %v1741_v57 = vpop.eup %1740 }
 0x659   :  { %v1249_v61 = vmul.f32 %v1741_v57, %v2648_v7 }
 0x65a   :  { %v1220_v32 = vpop.xlane.xlu1 %1219 }
 0x65b   :  { %1748 = vrcp.f32 %v1220_v32 }
 0x65c   :  { %v1743_v9 = vpop.eup %1742 }
 0x65d   :  { %v1250_v22 = vmul.f32 %v1743_v9, %v2652_v16 }
 0x65e   :  { %v1222_v34 = vpop.xlane.xlu1 %1221 }
 0x65f   :  { %1750 = vrcp.f32 %v1222_v34 }
 0x660   :  { %v1745_v18 = vpop.eup %1744 }
 0x661   :  { %v1251_v11 = vmul.f32 %v1745_v18, %v2655_v26 }
 0x664   :  { %v1747_v40 = vpop.eup %1746 }
 0x665   :  { %v1252_v23 = vmul.f32 %v1747_v40, %v2658_v56 }
 0x668   :  { %v1749_v7 = vpop.eup %1748 }
 0x669   :  { %v1253_v5 = vmul.f32 %v1749_v7, %v2661_v3 }
 0x66c   :  { %v1751_v52 = vpop.eup %1750 }
 0x66d   :  { %v1254_v17 = vmul.f32 %v1751_v52, %v2664_v63 }
 0x684   :  { %v1271_v27 = vpop.trf.xlu1 }
 0x685   :  { %v2684_v46 = vrot.slane %v1271_v27, %v2071_v2 }
 0x687   :  { %v1291_v0 = vmul.f32 %v2684_v46, %v1239_v6  ;;  %v1292_v38 = vmul.f32 %v2684_v46, %v1240_v43  ;;  %v1293_v2 = vmul.f32 %v2684_v46, %v1241_v48  ;;  %v1294_v47 = vmul.f32 %v2684_v46, %v1242_v19  ;;  %v1785_v6 = vld [vmem:[%s2848_s0] sm:$0xff]  ;;  %v1786_v48 = vld [vmem:[%s2848_s0 + $0x8] sm:$0xff] }
 0x688   :  { %v1295_v33 = vmul.f32 %v2684_v46, %v1243_v41  ;;  %v1296_v12 = vmul.f32 %v2684_v46, %v1244_v28  ;;  %v1297_v30 = vmul.f32 %v2684_v46, %v1245_v35  ;;  %v1298_v58 = vmul.f32 %v2684_v46, %v1246_v51  ;;  %v1787_v41 = vld [vmem:[%s2848_s0 + $0x10] sm:$0xff] }
 0x689   :  { %1307 = vadd.xlane.f32.xlu0 %v1291_v0  ;;  %v1299_v54 = vmul.f32 %v2684_v46, %v1247_v31  ;;  %v1300_v14 = vmul.f32 %v2684_v46, %v1248_v55  ;;  %v1301_v29 = vmul.f32 %v2684_v46, %v1249_v61  ;;  %v1302_v20 = vmul.f32 %v2684_v46, %v1250_v22 }
 0x68a   :  { %v1303_v53 = vmul.f32 %v2684_v46, %v1251_v11  ;;  %v1304_v45 = vmul.f32 %v2684_v46, %v1252_v23  ;;  %v1305_v16 = vmul.f32 %v2684_v46, %v1253_v5  ;;  %v1306_v26 = vmul.f32 %v2684_v46, %v1254_v17 }
 0x68d   :  { %1309 = vadd.xlane.f32.xlu0 %v1292_v38 }
 0x691   :  { %1311 = vadd.xlane.f32.xlu0 %v1293_v2 }
 0x695   :  { %1313 = vadd.xlane.f32.xlu0 %v1294_v47 }
 0x699   :  { %1315 = vadd.xlane.f32.xlu0 %v1295_v33 }
 0x69d   :  { %1317 = vadd.xlane.f32.xlu0 %v1296_v12  ;;  %v1788_v12 = vld [vmem:[%s2848_s0 + $0x18] sm:$0xff] }
 0x6a1   :  { %1319 = vadd.xlane.f32.xlu0 %v1297_v30 }
 0x6a5   :  { %1321 = vadd.xlane.f32.xlu0 %v1298_v58  ;;  %v1789_v58 = vld [vmem:[%s2848_s0 + $0x20] sm:$0xff] }
 0x6a9   :  { %1323 = vadd.xlane.f32.xlu0 %v1299_v54 }
 0x6ad   :  { %1325 = vadd.xlane.f32.xlu0 %v1300_v14  ;;  %v1790_v14 = vld [vmem:[%s2848_s0 + $0x28] sm:$0xff] }
 0x6b1   :  { %1327 = vadd.xlane.f32.xlu0 %v1301_v29 }
 0x6b5   :  { %1329 = vadd.xlane.f32.xlu0 %v1302_v20  ;;  %v1791_v20 = vld [vmem:[%s2848_s0 + $0x30] sm:$0xff] }
 0x6b9   :  { %1331 = vadd.xlane.f32.xlu0 %v1303_v53 }
 0x6bd   :  { %1333 = vadd.xlane.f32.xlu0 %v1304_v45  ;;  %v1792_v45 = vld [vmem:[%s2848_s0 + $0x38] sm:$0xff] }
 0x6c1   :  { %1335 = vadd.xlane.f32.xlu0 %v1305_v16 }
 0x6c5   :  { %1337 = vadd.xlane.f32.xlu0 %v1306_v26 }
 0x712   :  { %v1308_v8 = vpop.xlane.xlu0 %1307 }
 0x713   :  { %v1340_v56 = vadd.f32 %v2718_v13, %v1308_v8  ;;  %v1793_v8 = vld [vmem:[%s2848_s0 + $0x40] sm:$0xff] }
 0x715   :  { %v1356_v59 = vmax.f32 %v1340_v56, 0.0 }
 0x716   :  { %v1310_v15 = vpop.xlane.xlu0 %1309 }
 0x717   :  { %1752 = vtanh.f32 %v1356_v59  ;;  %v1341_v3 = vadd.f32 %v2718_v13, %v1310_v15 }
 0x719   :  { %v1357_v24 = vmax.f32 %v1341_v3, 0.0 }
 0x71a   :  { %v1312_v25 = vpop.xlane.xlu0 %1311 }
 0x71b   :  { %1754 = vtanh.f32 %v1357_v24  ;;  %v1342_v1 = vadd.f32 %v2718_v13, %v1312_v25  ;;  %v1794_v25 = vld [vmem:[%s2848_s0 + $0x48] sm:$0xff] }
 0x71d   :  { %v1358_v63 = vmax.f32 %v1342_v1, 0.0 }
 0x71e   :  { %v1314_v37 = vpop.xlane.xlu0 %1313 }
 0x71f   :  { %1756 = vtanh.f32 %v1358_v63  ;;  %v1343_v32 = vadd.f32 %v2718_v13, %v1314_v37 }
 0x721   :  { %v1359_v34 = vmax.f32 %v1343_v32, 0.0 }
 0x722   :  { %v1316_v39 = vpop.xlane.xlu0 %1315 }
 0x723   :  { %1758 = vtanh.f32 %v1359_v34  ;;  %v1344_v27 = vadd.f32 %v2718_v13, %v1316_v39  ;;  %v1795_v39 = vld [vmem:[%s2848_s0 + $0x50] sm:$0xff] }
 0x724   :  { %v1753_v46 = vpop.eup %1752 }
 0x725   :  { %v1388_v44 = vmul.f32 %v1785_v6, %v1753_v46  ;;  %v1360_v0 = vmax.f32 %v1344_v27, 0.0 }
 0x726   :  { %v1318_v43 = vpop.xlane.xlu0 %1317 }
 0x727   :  { %1404 = vst.msk [vmem:[%s2852_s4] sm:$0xff] %vm2898_vm1, %v1388_v44  ;;  %1760 = vtanh.f32 %v1360_v0  ;;  %v1345_v10 = vadd.f32 %v2718_v13, %v1318_v43  ;;  %v1796_v43 = vld [vmem:[%s2848_s0 + $0x58] sm:$0xff] }
 0x728   :  { %v1755_v38 = vpop.eup %1754 }
 0x729   :  { %v1389_v21 = vmul.f32 %v1786_v48, %v1755_v38  ;;  %v1361_v2 = vmax.f32 %v1345_v10, 0.0 }
 0x72a   :  { %v1320_v19 = vpop.xlane.xlu0 %1319 }
 0x72b   :  { %1405 = vst.msk [vmem:[%s2852_s4 + $0x8] sm:$0xff] %vm2899_vm0, %v1389_v21  ;;  %1762 = vtanh.f32 %v1361_v2  ;;  %v1346_v42 = vadd.f32 %v2718_v13, %v1320_v19  ;;  %v1797_v21 = vld [vmem:[%s2848_s0 + $0x60] sm:$0xff]  ;;  %v1798_v19 = vld [vmem:[%s2848_s0 + $0x68] sm:$0xff] }
 0x72c   :  { %v1757_v47 = vpop.eup %1756 }
 0x72d   :  { %v1390_v49 = vmul.f32 %v1787_v41, %v1757_v47  ;;  %v1362_v33 = vmax.f32 %v1346_v42, 0.0  ;;  %v1799_v41 = vld [vmem:[%s2848_s0 + $0x70] sm:$0xff] }
 0x72e   :  { %v1322_v28 = vpop.xlane.xlu0 %1321 }
 0x72f   :  { %1406 = vst.msk [vmem:[%s2852_s4 + $0x10] sm:$0xff] %vm2900_vm12, %v1390_v49  ;;  %1764 = vtanh.f32 %v1362_v33  ;;  %v1347_v50 = vadd.f32 %v2718_v13, %v1322_v28  ;;  %v1800_v28 = vld [vmem:[%s2848_s0 + $0x78] sm:$0xff] }
 0x730   :  { %v1759_v60 = vpop.eup %1758 }
 0x731   :  { %v1391_v35 = vmul.f32 %v1788_v12, %v1759_v60  ;;  %v1363_v62 = vmax.f32 %v1347_v50, 0.0 }
 0x732   :  { %v1324_v30 = vpop.xlane.xlu0 %1323 }
 0x733   :  { %1407 = vst.msk [vmem:[%s2852_s4 + $0x18] sm:$0xff] %vm2901_vm3, %v1391_v35  ;;  %1766 = vtanh.f32 %v1363_v62  ;;  %v1348_v51 = vadd.f32 %v2718_v13, %v1324_v30 }
 0x734   :  { %v1761_v4 = vpop.eup %1760 }
 0x735   :  { %v1392_v31 = vmul.f32 %v1789_v58, %v1761_v4  ;;  %v1364_v36 = vmax.f32 %v1348_v51, 0.0 }
 0x736   :  { %v1326_v54 = vpop.xlane.xlu0 %1325 }
 0x737   :  { %1408 = vst.msk [vmem:[%s2852_s4 + $0x20] sm:$0xff] %vm2902_vm4, %v1392_v31  ;;  %1768 = vtanh.f32 %v1364_v36  ;;  %v1349_v55 = vadd.f32 %v2718_v13, %v1326_v54 }
 0x738   :  { %v1763_v57 = vpop.eup %1762 }
 0x739   :  { %v1393_v61 = vmul.f32 %v1790_v14, %v1763_v57  ;;  %v1365_v9 = vmax.f32 %v1349_v55, 0.0 }
 0x73a   :  { %v1328_v29 = vpop.xlane.xlu0 %1327 }
 0x73b   :  { %1409 = vst.msk [vmem:[%s2852_s4 + $0x28] sm:$0xff] %vm2903_vm10, %v1393_v61  ;;  %1770 = vtanh.f32 %v1365_v9  ;;  %v1350_v22 = vadd.f32 %v2718_v13, %v1328_v29 }
 0x73c   :  { %v1765_v18 = vpop.eup %1764 }
 0x73d   :  { %v1394_v11 = vmul.f32 %v1791_v20, %v1765_v18  ;;  %v1366_v40 = vmax.f32 %v1350_v22, 0.0 }
 0x73e   :  { %v1330_v53 = vpop.xlane.xlu0 %1329 }
 0x73f   :  { %1410 = vst.msk [vmem:[%s2852_s4 + $0x30] sm:$0xff] %vm2904_vm8, %v1394_v11  ;;  %1772 = vtanh.f32 %v1366_v40  ;;  %v1351_v23 = vadd.f32 %v2718_v13, %v1330_v53 }
 0x740   :  { %v1767_v7 = vpop.eup %1766 }
 0x741   :  { %v1395_v5 = vmul.f32 %v1792_v45, %v1767_v7  ;;  %v1367_v52 = vmax.f32 %v1351_v23, 0.0 }
 0x742   :  { %v1332_v16 = vpop.xlane.xlu0 %1331 }
 0x743   :  { %1411 = vst.msk [vmem:[%s2852_s4 + $0x38] sm:$0xff] %vm2905_vm14, %v1395_v5  ;;  %1774 = vtanh.f32 %v1367_v52  ;;  %v1352_v17 = vadd.f32 %v2718_v13, %v1332_v16 }
 0x744   :  { %v1769_v26 = vpop.eup %1768 }
 0x745   :  { %v1396_v56 = vmul.f32 %v1793_v8, %v1769_v26  ;;  %v1368_v59 = vmax.f32 %v1352_v17, 0.0 }
 0x746   :  { %v1334_v15 = vpop.xlane.xlu0 %1333 }
 0x747   :  { %1412 = vst.msk [vmem:[%s2852_s4 + $0x40] sm:$0xff] %vm2906_vm6, %v1396_v56  ;;  %1776 = vtanh.f32 %v1368_v59  ;;  %v1353_v3 = vadd.f32 %v2718_v13, %v1334_v15 }
 0x748   :  { %v1771_v24 = vpop.eup %1770 }
 0x749   :  { %v1397_v1 = vmul.f32 %v1794_v25, %v1771_v24  ;;  %v1369_v63 = vmax.f32 %v1353_v3, 0.0 }
 0x74a   :  { %v1336_v37 = vpop.xlane.xlu0 %1335 }
 0x74b   :  { %1413 = vst.msk [vmem:[%s2852_s4 + $0x48] sm:$0xff] %vm2907_vm11, %v1397_v1  ;;  %1778 = vtanh.f32 %v1369_v63  ;;  %v1354_v32 = vadd.f32 %v2718_v13, %v1336_v37 }
 0x74c   :  { %v1773_v34 = vpop.eup %1772 }
 0x74d   :  { %v1398_v27 = vmul.f32 %v1795_v39, %v1773_v34  ;;  %v1370_v46 = vmax.f32 %v1354_v32, 0.0 }
 0x74e   :  { %v1338_v6 = vpop.xlane.xlu0 %1337 }
 0x74f   :  { %1414 = vst.msk [vmem:[%s2852_s4 + $0x50] sm:$0xff] %vm2908_vm15, %v1398_v27  ;;  %1780 = vtanh.f32 %v1370_v46  ;;  %v1355_v44 = vadd.f32 %v2718_v13, %v1338_v6 }
 0x750   :  { %v1775_v0 = vpop.eup %1774 }
 0x751   :  { %v1399_v10 = vmul.f32 %v1796_v43, %v1775_v0  ;;  %v1371_v38 = vmax.f32 %v1355_v44, 0.0 }
 0x753   :  { %1415 = vst.msk [vmem:[%s2852_s4 + $0x58] sm:$0xff] %vm2909_vm5, %v1399_v10  ;;  %1782 = vtanh.f32 %v1371_v38 }
 0x754   :  { %v1777_v48 = vpop.eup %1776 }
 0x755   :  { %v1400_v2 = vmul.f32 %v1797_v21, %v1777_v48 }
 0x757   :  { %1416 = vst.msk [vmem:[%s2852_s4 + $0x60] sm:$0xff] %vm2910_vm9, %v1400_v2 }
 0x758   :  { %v1779_v13 = vpop.eup %1778 }
 0x759   :  { %v1401_v42 = vmul.f32 %v1798_v19, %v1779_v13 }
 0x75b   :  { %1417 = vst.msk [vmem:[%s2852_s4 + $0x68] sm:$0xff] %vm2911_vm13, %v1401_v42 }
 0x75c   :  { %v1781_v47 = vpop.eup %1780 }
 0x75d   :  { %v1402_v49 = vmul.f32 %v1799_v41, %v1781_v47 }
 0x75f   :  { %1418 = vst.msk [vmem:[%s2852_s4 + $0x70] sm:$0xff] %vm2912_vm2, %v1402_v49 }
 0x760   :  { %v1783_v33 = vpop.eup %1782 }
 0x761   :  { %v1403_v50 = vmul.f32 %v1800_v28, %v1783_v33 }
 0x763   :  { %1419 = vst.msk [vmem:[%s2852_s4 + $0x78] sm:$0xff] %vm2913_vm7, %v1403_v50 }
 0x764   :  { %1424 = vsyncpa [#allocation3], 1 }

</bundles_post_ra>
